<compile_context>
chip_gen: v7x
topology: tpu7x:2x2x1
jax: 0.10.0
libtpu: 0.0.40
codegen_flags: <defaults>
</compile_context>

<pallas_src>
import jax
import jax.numpy as jnp
from jax import lax
from jax.experimental import pallas as pl
from jax.experimental.pallas import tpu as pltpu


# ----------------------------------------------------------------------------
# Dimensions (hidden widths padded to lane-friendly sizes; K stays 1400).
# ----------------------------------------------------------------------------
K_RAW = 1400                     # input features (full last dim of x block)
H1_RAW, H1_PAD = 200, 256        # team hidden:  200 -> 2 * 128
TEAM_OUT = 128                   # team_model output (already aligned)
F_HID = 32                       # final_model hidden width
C_RAW, C_PAD = 2, 128            # classes: 2 -> 128-wide lane-dense output


def _round_up(v, m):
    return (v + m - 1) // m * m


# ----------------------------------------------------------------------------
# Kernel: 6-layer MLP + 2-class softmax (sigmoid closed form) on one batch
# tile.  Weights stay VMEM-resident across grid steps (constant index_maps);
# x/out tiles stream through the double-buffered pipeline.
# ----------------------------------------------------------------------------
def perceptron_kernel(x_ref,
                      w1, b1, w2, b2, w3, b3,
                      w4, b4, w5, b5, wd, bd,
                      o_ref):
    relu = lambda v: jnp.maximum(v, 0.0)
    bf16, f32 = jnp.bfloat16, jnp.float32

    x = x_ref[...].astype(bf16)                                     # (tb, 1400)

    # team_model: 1400 -> 256 -> 256 -> 128 (zero padding is mathematically inert)
    h = relu(jnp.dot(x, w1[...], preferred_element_type=f32) + b1[...])
    h = relu(jnp.dot(h.astype(bf16), w2[...], preferred_element_type=f32) + b2[...])
    h = jnp.dot(h.astype(bf16), w3[...], preferred_element_type=f32) + b3[...]

    # final_model hidden layers: 128 -> 32 -> 32
    h = relu(jnp.dot(h.astype(bf16), w4[...], preferred_element_type=f32) + b4[...])
    h = relu(jnp.dot(h.astype(bf16), w5[...], preferred_element_type=f32) + b5[...])

    # 2-class softmax closed form:
    #   d = l1 - l0 = h @ (w6[:,1]-w6[:,0]) + (b6[1]-b6[0]);  p1 = sigmoid(d)
    d = jnp.sum(h * wd[...], axis=-1, keepdims=True) + bd[...]      # (tb, 1) f32
    p1 = 1.0 / (1.0 + jnp.exp(-d))                                  # exact divide
    p0 = 1.0 - p1

    # Scatter (p0, p1) into lanes 0/1 of the lane-dense 128-wide output.
    lane = lax.broadcasted_iota(jnp.int32, o_ref.shape, 1)
    out = jnp.where(lane == 0, p0, jnp.where(lane == 1, p1, 0.0))
    o_ref[...] = out.astype(o_ref.dtype)


# ----------------------------------------------------------------------------
# Parameter preparation: zero-pad hidden widths, cast matmul weights to bf16,
# fold the last layer into a logit-difference vector.  Done once at setup.
# ----------------------------------------------------------------------------
def _pad2(a, rows, cols):
    return jnp.pad(a, ((0, rows - a.shape[0]), (0, cols - a.shape[1])))


def pad_params(params):
    (w1, b1), (w2, b2), (w3, b3), (w4, b4), (w5, b5), (w6, b6) = params
    bf16, f32 = jnp.bfloat16, jnp.float32

    w1p = _pad2(w1, K_RAW, H1_PAD).astype(bf16);   b1p = _pad2(b1, 1, H1_PAD).astype(f32)
    w2p = _pad2(w2, H1_PAD, H1_PAD).astype(bf16);  b2p = _pad2(b2, 1, H1_PAD).astype(f32)
    w3p = _pad2(w3, H1_PAD, TEAM_OUT).astype(bf16); b3p = b3.astype(f32)
    w4p = w4.astype(bf16);                          b4p = b4.astype(f32)
    w5p = w5.astype(bf16);                          b5p = b5.astype(f32)
    # Last layer folded into the 2-class closed form (kept f32; it is tiny).
    wd = (w6[:, 1] - w6[:, 0]).reshape(1, F_HID).astype(f32)
    bd = (b6[:, 1] - b6[:, 0]).reshape(1, 1).astype(f32)
    return (w1p, b1p, w2p, b2p, w3p, b3p, w4p, b4p, w5p, b5p, wd, bd)


# ----------------------------------------------------------------------------
# Batch-tile / VMEM-limit selection.
# ----------------------------------------------------------------------------
def _choose_tile(B):
    # Per-row VMEM bytes: double-buffered f32 x tile + in-kernel bf16 copy
    # + f32/bf16 hidden activations + double-buffered bf16 output tile.
    row_bytes = 2 * K_RAW * 4 + K_RAW * 2 + 3 * H1_PAD * 4 + H1_PAD * 2 + 2 * C_PAD * 2
    fixed_bytes = 6 << 20           # weights (double-buffered) + compiler scratch slack
    try:
        cap = int(pltpu.get_tpu_info().vmem_capacity_bytes)
    except Exception:               # pragma: no cover - conservative fallback
        cap = 64 << 20              # v7x per-core VMEM (smallest current generation)

    budget = (cap * 3) // 5         # ~60% of VMEM for our tiles
    tb_cap = (budget - fixed_bytes) // row_bytes
    tb_cap = max(8, min(2048, tb_cap))                      # 2048 cap: safe on v7x 64 MiB
    tb_cap = (tb_cap // 128) * 128 if tb_cap >= 128 else (tb_cap // 8) * 8

    if B <= tb_cap:
        # Prefer >=2 grid steps so ("parallel",) gives the second TensorCore work
        # on v7x; tiny batches use a single full-extent block (no 8-row padding).
        tb = _round_up(pl.cdiv(B, 2), 8) if B >= 16 else B
    else:
        tb = tb_cap

    est = tb * row_bytes + fixed_bytes
    vmem_limit = min(cap - (8 << 20), max(32 << 20, est + (8 << 20)))
    return tb, int(vmem_limit)


# ----------------------------------------------------------------------------
# Wrapper: batch-tiled pallas_call.  No input copy, no batch rounding.
# ----------------------------------------------------------------------------
def perceptron_forward(x, padded_params):
    """x: (B, 10, 140) float32 -> probabilities (B, 2) float32."""
    B = x.shape[0]
    # split(dim=1) + squeeze + cat(dim=1) == flatten the last two dims (free reshape).
    x_flat = x.reshape(B, -1)
    assert x_flat.shape[1] == K_RAW
    if x_flat.dtype != jnp.float32:
        x_flat = x_flat.astype(jnp.float32)

    tb, vmem_limit = _choose_tile(B)
    grid = (pl.cdiv(B, tb),)        # ragged last block: masked stores, rows independent

    const2 = lambda i: (0, 0)
    w_specs = [pl.BlockSpec(p.shape, const2) for p in padded_params]

    flops = 2 * B * (K_RAW * H1_PAD + H1_PAD * H1_PAD + H1_PAD * TEAM_OUT
                     + TEAM_OUT * F_HID + F_HID * F_HID + F_HID)
    bytes_accessed = (B * K_RAW * 4
                      + sum(int(p.size) * p.dtype.itemsize for p in padded_params)
                      + B * C_PAD * 2)

    out = pl.pallas_call(
        perceptron_kernel,
        out_shape=jax.ShapeDtypeStruct((B, C_PAD), jnp.bfloat16),
        grid=grid,
        in_specs=[pl.BlockSpec((tb, K_RAW), lambda i: (i, 0))] + w_specs,
        out_specs=pl.BlockSpec((tb, C_PAD), lambda i: (i, 0)),
        compiler_params=pltpu.CompilerParams(
            dimension_semantics=("parallel",),
            vmem_limit_bytes=vmem_limit),
        cost_estimate=pl.CostEstimate(flops=flops,
                                      transcendentals=B,
                                      bytes_accessed=bytes_accessed),
    )(x_flat, *padded_params)

    return out[:, :C_RAW].astype(jnp.float32)


# ----------------------------------------------------------------------------
# Deterministic parameter initialization (PyTorch-Linear-style uniform).
# ----------------------------------------------------------------------------
def init_params(key):
    layer_dims = [(1400, 200), (200, 200), (200, 128),    # team_model
                  (128, 32), (32, 32), (32, 2)]            # final_model
    params = []
    for (fan_in, fan_out) in layer_dims:
        key, kw, kb = jax.random.split(key, 3)
        bound = 1.0 / jnp.sqrt(jnp.float32(fan_in))
        w = jax.random.uniform(kw, (fan_in, fan_out), jnp.float32, -bound, bound)
        b = jax.random.uniform(kb, (1, fan_out), jnp.float32, -bound, bound)
        params.append((w, b))
    return params


# Pure-JAX f32 reference for a sanity check.
def reference_forward(x, params):
    B = x.shape[0]
    h = x.reshape(B, -1).astype(jnp.float32)
    for i, (w, b) in enumerate(params):
        h = h @ w + b
        if i not in (2, 5):   # no activation after the last layer of each sub-MLP
            h = jnp.maximum(h, 0.0)
    return jax.nn.softmax(h, axis=-1)


if __name__ == "__main__":
    key = jax.random.PRNGKey(0)
    key, kx = jax.random.split(key)

    B = 2
    x = jax.random.normal(kx, (B, 10, 140), dtype=jnp.float32)

    params = init_params(key)
    padded_params = pad_params(params)

    out = perceptron_forward(x, padded_params)
    out = jax.block_until_ready(out)

    ref = reference_forward(x, params)
    assert out.shape == (B, 2)
    # bf16 MXU operands / bf16 output quantization -> loosened tolerance vs. f32 ref.
    assert jnp.allclose(jnp.sum(out, axis=-1), 1.0, atol=1e-2)
    assert jnp.allclose(out, ref, atol=3e-2, rtol=3e-2), (out, ref)

    print("KERNEL_OK")
</pallas_src>

<mosaic_0001>
module attributes {stable_mosaic.version = 11 : i64} {
  func.func @perceptron_kernel(%arg0: i32, %arg1: memref<2x1400xf32, #tpu.memory_space<vmem>>, %arg2: memref<1400x256xbf16, #tpu.memory_space<vmem>>, %arg3: memref<1x256xf32, #tpu.memory_space<vmem>>, %arg4: memref<256x256xbf16, #tpu.memory_space<vmem>>, %arg5: memref<1x256xf32, #tpu.memory_space<vmem>>, %arg6: memref<256x128xbf16, #tpu.memory_space<vmem>>, %arg7: memref<1x128xf32, #tpu.memory_space<vmem>>, %arg8: memref<128x32xbf16, #tpu.memory_space<vmem>>, %arg9: memref<1x32xf32, #tpu.memory_space<vmem>>, %arg10: memref<32x32xbf16, #tpu.memory_space<vmem>>, %arg11: memref<1x32xf32, #tpu.memory_space<vmem>>, %arg12: memref<1x32xf32, #tpu.memory_space<vmem>>, %arg13: memref<1x1xf32, #tpu.memory_space<vmem>>, %arg14: memref<2x128xbf16, #tpu.memory_space<vmem>>) attributes {dimension_semantics = [#tpu.dimension_semantics<parallel>], iteration_bounds = array<i64: 1>, scalar_prefetch = 0 : i64, scratch_operands = 0 : i64, tpu.core_type = #tpu.core_type<tc>, window_params = [{transform_indices = @transform_0, window_bounds = array<i64: 2, 1400>}, {pipeline_mode = #tpu.pipeline_mode<synchronous>, transform_indices = @transform_1, window_bounds = array<i64: 1400, 256>}, {pipeline_mode = #tpu.pipeline_mode<synchronous>, transform_indices = @transform_2, window_bounds = array<i64: 1, 256>}, {pipeline_mode = #tpu.pipeline_mode<synchronous>, transform_indices = @transform_3, window_bounds = array<i64: 256, 256>}, {pipeline_mode = #tpu.pipeline_mode<synchronous>, transform_indices = @transform_4, window_bounds = array<i64: 1, 256>}, {pipeline_mode = #tpu.pipeline_mode<synchronous>, transform_indices = @transform_5, window_bounds = array<i64: 256, 128>}, {pipeline_mode = #tpu.pipeline_mode<synchronous>, transform_indices = @transform_6, window_bounds = array<i64: 1, 128>}, {pipeline_mode = #tpu.pipeline_mode<synchronous>, transform_indices = @transform_7, window_bounds = array<i64: 128, 32>}, {pipeline_mode = #tpu.pipeline_mode<synchronous>, transform_indices = @transform_8, window_bounds = array<i64: 1, 32>}, {pipeline_mode = #tpu.pipeline_mode<synchronous>, transform_indices = @transform_9, window_bounds = array<i64: 32, 32>}, {pipeline_mode = #tpu.pipeline_mode<synchronous>, transform_indices = @transform_10, window_bounds = array<i64: 1, 32>}, {pipeline_mode = #tpu.pipeline_mode<synchronous>, transform_indices = @transform_11, window_bounds = array<i64: 1, 32>}, {pipeline_mode = #tpu.pipeline_mode<synchronous>, transform_indices = @transform_12, window_bounds = array<i64: 1, 1>}, {transform_indices = @transform_13, window_bounds = array<i64: 2, 128>}]} {
    %c0 = arith.constant 0 : index
    %c0_0 = arith.constant 0 : index
    %0 = vector.load %arg1[%c0, %c0_0] : memref<2x1400xf32, #tpu.memory_space<vmem>>, vector<2x1400xf32>
    %1 = arith.truncf %0 : vector<2x1400xf32> to vector<2x1400xbf16>
    %c0_1 = arith.constant 0 : index
    %c0_2 = arith.constant 0 : index
    %2 = vector.load %arg2[%c0_1, %c0_2] : memref<1400x256xbf16, #tpu.memory_space<vmem>>, vector<1400x256xbf16>
    %cst = arith.constant dense<0.000000e+00> : vector<2x256xf32>
    %3 = tpu.matmul %1, %2, %cst {dimension_numbers = #tpu.dot_dimension_numbers<[1], [0], [0], [1], [0, 0, 1, 1], [], []>} : vector<2x1400xbf16>, vector<1400x256xbf16>, vector<2x256xf32> -> vector<2x256xf32>
    %c0_3 = arith.constant 0 : index
    %c0_4 = arith.constant 0 : index
    %4 = vector.load %arg3[%c0_3, %c0_4] : memref<1x256xf32, #tpu.memory_space<vmem>>, vector<1x256xf32>
    %5 = vector.broadcast %4 : vector<1x256xf32> to vector<2x256xf32>
    %6 = arith.addf %3, %5 : vector<2x256xf32>
    %cst_5 = arith.constant 0.000000e+00 : f32
    %7 = vector.broadcast %cst_5 : f32 to vector<2x256xf32>
    %8 = arith.maximumf %6, %7 : vector<2x256xf32>
    %9 = arith.truncf %8 : vector<2x256xf32> to vector<2x256xbf16>
    %c0_6 = arith.constant 0 : index
    %c0_7 = arith.constant 0 : index
    %10 = vector.load %arg4[%c0_6, %c0_7] : memref<256x256xbf16, #tpu.memory_space<vmem>>, vector<256x256xbf16>
    %cst_8 = arith.constant dense<0.000000e+00> : vector<2x256xf32>
    %11 = tpu.matmul %9, %10, %cst_8 {dimension_numbers = #tpu.dot_dimension_numbers<[1], [0], [0], [1], [0, 0, 1, 1], [], []>} : vector<2x256xbf16>, vector<256x256xbf16>, vector<2x256xf32> -> vector<2x256xf32>
    %c0_9 = arith.constant 0 : index
    %c0_10 = arith.constant 0 : index
    %12 = vector.load %arg5[%c0_9, %c0_10] : memref<1x256xf32, #tpu.memory_space<vmem>>, vector<1x256xf32>
    %13 = vector.broadcast %12 : vector<1x256xf32> to vector<2x256xf32>
    %14 = arith.addf %11, %13 : vector<2x256xf32>
    %cst_11 = arith.constant 0.000000e+00 : f32
    %15 = vector.broadcast %cst_11 : f32 to vector<2x256xf32>
    %16 = arith.maximumf %14, %15 : vector<2x256xf32>
    %17 = arith.truncf %16 : vector<2x256xf32> to vector<2x256xbf16>
    %c0_12 = arith.constant 0 : index
    %c0_13 = arith.constant 0 : index
    %18 = vector.load %arg6[%c0_12, %c0_13] : memref<256x128xbf16, #tpu.memory_space<vmem>>, vector<256x128xbf16>
    %cst_14 = arith.constant dense<0.000000e+00> : vector<2x128xf32>
    %19 = tpu.matmul %17, %18, %cst_14 {dimension_numbers = #tpu.dot_dimension_numbers<[1], [0], [0], [1], [0, 0, 1, 1], [], []>} : vector<2x256xbf16>, vector<256x128xbf16>, vector<2x128xf32> -> vector<2x128xf32>
    %c0_15 = arith.constant 0 : index
    %c0_16 = arith.constant 0 : index
    %20 = vector.load %arg7[%c0_15, %c0_16] : memref<1x128xf32, #tpu.memory_space<vmem>>, vector<1x128xf32>
    %21 = vector.broadcast %20 : vector<1x128xf32> to vector<2x128xf32>
    %22 = arith.addf %19, %21 : vector<2x128xf32>
    %23 = arith.truncf %22 : vector<2x128xf32> to vector<2x128xbf16>
    %c0_17 = arith.constant 0 : index
    %c0_18 = arith.constant 0 : index
    %24 = vector.load %arg8[%c0_17, %c0_18] : memref<128x32xbf16, #tpu.memory_space<vmem>>, vector<128x32xbf16>
    %cst_19 = arith.constant dense<0.000000e+00> : vector<2x32xf32>
    %25 = tpu.matmul %23, %24, %cst_19 {dimension_numbers = #tpu.dot_dimension_numbers<[1], [0], [0], [1], [0, 0, 1, 1], [], []>} : vector<2x128xbf16>, vector<128x32xbf16>, vector<2x32xf32> -> vector<2x32xf32>
    %c0_20 = arith.constant 0 : index
    %c0_21 = arith.constant 0 : index
    %26 = vector.load %arg9[%c0_20, %c0_21] : memref<1x32xf32, #tpu.memory_space<vmem>>, vector<1x32xf32>
    %27 = vector.broadcast %26 : vector<1x32xf32> to vector<2x32xf32>
    %28 = arith.addf %25, %27 : vector<2x32xf32>
    %cst_22 = arith.constant 0.000000e+00 : f32
    %29 = vector.broadcast %cst_22 : f32 to vector<2x32xf32>
    %30 = arith.maximumf %28, %29 : vector<2x32xf32>
    %31 = arith.truncf %30 : vector<2x32xf32> to vector<2x32xbf16>
    %c0_23 = arith.constant 0 : index
    %c0_24 = arith.constant 0 : index
    %32 = vector.load %arg10[%c0_23, %c0_24] : memref<32x32xbf16, #tpu.memory_space<vmem>>, vector<32x32xbf16>
    %cst_25 = arith.constant dense<0.000000e+00> : vector<2x32xf32>
    %33 = tpu.matmul %31, %32, %cst_25 {dimension_numbers = #tpu.dot_dimension_numbers<[1], [0], [0], [1], [0, 0, 1, 1], [], []>} : vector<2x32xbf16>, vector<32x32xbf16>, vector<2x32xf32> -> vector<2x32xf32>
    %c0_26 = arith.constant 0 : index
    %c0_27 = arith.constant 0 : index
    %34 = vector.load %arg11[%c0_26, %c0_27] : memref<1x32xf32, #tpu.memory_space<vmem>>, vector<1x32xf32>
    %35 = vector.broadcast %34 : vector<1x32xf32> to vector<2x32xf32>
    %36 = arith.addf %33, %35 : vector<2x32xf32>
    %cst_28 = arith.constant 0.000000e+00 : f32
    %37 = vector.broadcast %cst_28 : f32 to vector<2x32xf32>
    %38 = arith.maximumf %36, %37 : vector<2x32xf32>
    %c0_29 = arith.constant 0 : index
    %c0_30 = arith.constant 0 : index
    %39 = vector.load %arg12[%c0_29, %c0_30] : memref<1x32xf32, #tpu.memory_space<vmem>>, vector<1x32xf32>
    %40 = vector.broadcast %39 : vector<1x32xf32> to vector<2x32xf32>
    %41 = arith.mulf %38, %40 : vector<2x32xf32>
    %cst_31 = arith.constant dense<0.000000e+00> : vector<2xf32>
    %42 = vector.multi_reduction <add>, %41, %cst_31 [1] : vector<2x32xf32> to vector<2xf32>
    %43 = vector.shape_cast %42 : vector<2xf32> to vector<2x1xf32>
    %c0_32 = arith.constant 0 : index
    %c0_33 = arith.constant 0 : index
    %44 = vector.load %arg13[%c0_32, %c0_33] : memref<1x1xf32, #tpu.memory_space<vmem>>, vector<1x1xf32>
    %45 = vector.broadcast %44 : vector<1x1xf32> to vector<2x1xf32>
    %46 = arith.addf %43, %45 : vector<2x1xf32>
    %cst_34 = arith.constant 0.000000e+00 : f32
    %47 = vector.broadcast %cst_34 : f32 to vector<2x1xf32>
    %48 = arith.subf %47, %46 : vector<2x1xf32>
    %49 = math.exp %48 : vector<2x1xf32>
    %cst_35 = arith.constant 1.000000e+00 : f32
    %50 = vector.broadcast %cst_35 : f32 to vector<2x1xf32>
    %51 = arith.addf %50, %49 : vector<2x1xf32>
    %cst_36 = arith.constant 1.000000e+00 : f32
    %52 = vector.broadcast %cst_36 : f32 to vector<2x1xf32>
    %53 = arith.divf %52, %51 : vector<2x1xf32>
    %cst_37 = arith.constant 1.000000e+00 : f32
    %54 = vector.broadcast %cst_37 : f32 to vector<2x1xf32>
    %55 = arith.subf %54, %53 : vector<2x1xf32>
    %56 = tpu.iota {dimensions = array<i32: 1>} : vector<2x128xi32>
    %c0_i32 = arith.constant 0 : i32
    %57 = vector.broadcast %c0_i32 : i32 to vector<2x128xi32>
    %58 = arith.cmpi eq, %56, %57 : vector<2x128xi32>
    %c1_i32 = arith.constant 1 : i32
    %59 = vector.broadcast %c1_i32 : i32 to vector<2x128xi32>
    %60 = arith.cmpi eq, %56, %59 : vector<2x128xi32>
    %cst_38 = arith.constant 0.000000e+00 : f32
    %61 = vector.shape_cast %53 : vector<2x1xf32> to vector<2x1xf32>
    %62 = vector.broadcast %61 : vector<2x1xf32> to vector<2x128xf32>
    %63 = vector.broadcast %cst_38 : f32 to vector<2x128xf32>
    %64 = arith.select %60, %62, %63 : vector<2x128xi1>, vector<2x128xf32>
    %65 = vector.shape_cast %55 : vector<2x1xf32> to vector<2x1xf32>
    %66 = vector.broadcast %65 : vector<2x1xf32> to vector<2x128xf32>
    %67 = arith.select %58, %66, %64 : vector<2x128xi1>, vector<2x128xf32>
    %68 = arith.truncf %67 : vector<2x128xf32> to vector<2x128xbf16>
    %c0_39 = arith.constant 0 : index
    %c0_40 = arith.constant 0 : index
    %69 = vector.load %arg14[%c0_39, %c0_40] : memref<2x128xbf16, #tpu.memory_space<vmem>>, vector<2x128xbf16>
    tpu.vector_store %arg14[%c0_39, %c0_40], %68 {strides = array<i32>} : memref<2x128xbf16, #tpu.memory_space<vmem>>, vector<2x128xbf16>,
    return
  }
  func.func @transform_0(%arg0: i32) -> (i32, i32) {
    %c0_i32 = arith.constant 0 : i32
    %c0_i32_0 = arith.constant 0 : i32
    return %arg0, %c0_i32 : i32, i32
  }
  func.func @transform_1(%arg0: i32) -> (i32, i32) {
    %c0_i32 = arith.constant 0 : i32
    %c0_i32_0 = arith.constant 0 : i32
    %c0_i32_1 = arith.constant 0 : i32
    return %c0_i32, %c0_i32_0 : i32, i32
  }
  func.func @transform_2(%arg0: i32) -> (i32, i32) {
    %c0_i32 = arith.constant 0 : i32
    %c0_i32_0 = arith.constant 0 : i32
    %c0_i32_1 = arith.constant 0 : i32
    return %c0_i32, %c0_i32_0 : i32, i32
  }
  func.func @transform_3(%arg0: i32) -> (i32, i32) {
    %c0_i32 = arith.constant 0 : i32
    %c0_i32_0 = arith.constant 0 : i32
    %c0_i32_1 = arith.constant 0 : i32
    return %c0_i32, %c0_i32_0 : i32, i32
  }
  func.func @transform_4(%arg0: i32) -> (i32, i32) {
    %c0_i32 = arith.constant 0 : i32
    %c0_i32_0 = arith.constant 0 : i32
    %c0_i32_1 = arith.constant 0 : i32
    return %c0_i32, %c0_i32_0 : i32, i32
  }
  func.func @transform_5(%arg0: i32) -> (i32, i32) {
    %c0_i32 = arith.constant 0 : i32
    %c0_i32_0 = arith.constant 0 : i32
    %c0_i32_1 = arith.constant 0 : i32
    return %c0_i32, %c0_i32_0 : i32, i32
  }
  func.func @transform_6(%arg0: i32) -> (i32, i32) {
    %c0_i32 = arith.constant 0 : i32
    %c0_i32_0 = arith.constant 0 : i32
    %c0_i32_1 = arith.constant 0 : i32
    return %c0_i32, %c0_i32_0 : i32, i32
  }
  func.func @transform_7(%arg0: i32) -> (i32, i32) {
    %c0_i32 = arith.constant 0 : i32
    %c0_i32_0 = arith.constant 0 : i32
    %c0_i32_1 = arith.constant 0 : i32
    return %c0_i32, %c0_i32_0 : i32, i32
  }
  func.func @transform_8(%arg0: i32) -> (i32, i32) {
    %c0_i32 = arith.constant 0 : i32
    %c0_i32_0 = arith.constant 0 : i32
    %c0_i32_1 = arith.constant 0 : i32
    return %c0_i32, %c0_i32_0 : i32, i32
  }
  func.func @transform_9(%arg0: i32) -> (i32, i32) {
    %c0_i32 = arith.constant 0 : i32
    %c0_i32_0 = arith.constant 0 : i32
    %c0_i32_1 = arith.constant 0 : i32
    return %c0_i32, %c0_i32_0 : i32, i32
  }
  func.func @transform_10(%arg0: i32) -> (i32, i32) {
    %c0_i32 = arith.constant 0 : i32
    %c0_i32_0 = arith.constant 0 : i32
    %c0_i32_1 = arith.constant 0 : i32
    return %c0_i32, %c0_i32_0 : i32, i32
  }
  func.func @transform_11(%arg0: i32) -> (i32, i32) {
    %c0_i32 = arith.constant 0 : i32
    %c0_i32_0 = arith.constant 0 : i32
    %c0_i32_1 = arith.constant 0 : i32
    return %c0_i32, %c0_i32_0 : i32, i32
  }
  func.func @transform_12(%arg0: i32) -> (i32, i32) {
    %c0_i32 = arith.constant 0 : i32
    %c0_i32_0 = arith.constant 0 : i32
    %c0_i32_1 = arith.constant 0 : i32
    return %c0_i32, %c0_i32_0 : i32, i32
  }
  func.func @transform_13(%arg0: i32) -> (i32, i32) {
    %c0_i32 = arith.constant 0 : i32
    %c0_i32_0 = arith.constant 0 : i32
    return %arg0, %c0_i32 : i32, i32
  }
}

</mosaic_0001>

<bundles_post_ra>
// kernel: tpu_custom_call.1
= control target key start
LH: loop header
LB: loop body
LE: loop exit
PB: predicated region body
PF: predicated region fallthrough
CT: control target
= control target key end

     0   :  { %s3195_s0 = inlined_call_operand.vmem [shape: f32[2,1400], index: 0, kind: input, shape index: {}]   ;;  %s3196_s1 = inlined_call_operand.hbm [shape: bf16[1400,256], index: 1, kind: input, shape index: {}]   ;;  %s3197_s2 = inlined_call_operand.vmem [shape: f32[1,256], index: 2, kind: input, shape index: {}]   ;;  %s3198_s3 = inlined_call_operand.hbm [shape: bf16[256,256], index: 3, kind: input, shape index: {}]   ;;  %s3199_s4 = inlined_call_operand.vmem [shape: f32[1,256], index: 4, kind: input, shape index: {}]   ;;  %s3200_s5 = inlined_call_operand.hbm [shape: bf16[256,128], index: 5, kind: input, shape index: {}]   ;;  %s3201_s6 = inlined_call_operand.vmem [shape: f32[1,128], index: 6, kind: input, shape index: {}]   ;;  %s3202_s7 = inlined_call_operand.vmem [shape: bf16[128,32], index: 7, kind: input, shape index: {}]   ;;  %s3203_s8 = inlined_call_operand.vmem [shape: f32[1,32], index: 8, kind: input, shape index: {}]   ;;  %s3204_s9 = inlined_call_operand.vmem [shape: bf16[32,32], index: 9, kind: input, shape index: {}]   ;;  %s3205_s10 = inlined_call_operand.vmem [shape: f32[1,32], index: 10, kind: input, shape index: {}]   ;;  %s3206_s11 = inlined_call_operand.vmem [shape: f32[1,32], index: 11, kind: input, shape index: {}]   ;;  %s3207_s12 = inlined_call_operand.<no memory space> [shape: f32[1,1], index: 12, kind: input, shape index: {}]   ;;  %s3208_s13 = inlined_call_operand.hbm [shape: bf16[2,128], index: 13, kind: output, shape index: {}]  }
   0x1   :  { %v18_v0 = vstv %s3207_s12 }
   0x2   :  { %19 = vst [vmem:[#allocation2] sm:$0x1] %v18_v0 }
   0x3   :  { %20 = vsyncpa [#allocation4], 0 }
   0x4   :  { %21 = vsyncpa [#allocation7], 0 }
   0x5   :  { %22 = vsyncpa [#allocation5], 0  ;;  %s2935_s27 = smov [#allocation6]   ;;  %s2936_s29 = smov [#allocation3]  }
   0x6   :  { %s44_s28 = sshll.u32 %s2935_s27, 4  ;;  %s30_s30 = sshll.u32 %s2936_s29, 4  ;;  %s45_s28 = int_to_ptr.vmem [resolvable:$true] %s44_s28  ;;  %s3020_s30 = int_to_ptr.vmem [resolvable:$true] %s30_s30 }
   0x7   :  { %s2841_s16 = scalar_lea.hbm %s3198_s3, 4096 }
   0x8   :  { %p2842_p0 = scmp.ne.s32.totalorder %s3198_s3, %s2841_s16  ;;  %p2845_p1 = scmp.lt.u32.totalorder %s2841_s16, %s3198_s3 }
   0xa   :  { %p2847_p2 = pnand %p2845_p1, %p2842_p0 }
   0xc   :  { %2850 = shalt.err (!%p2847_p2)
}
   0xd   :  { %s2851_s20 = scalar_lea.vmem %s45_s28, 4096  ;;  %p2856_p4 = scmp.lt.s32.totalorder %s45_s28, %s45_s28 }
   0xe   :  { %p2852_p3 = scmp.ne.s32.totalorder %s45_s28, %s2851_s20  ;;  %p2857_p5 = scmp.lt.s32.totalorder %s2851_s20, %s2851_s20 }
  0x10   :  { %p2858_p6 = por %p2857_p5, %p2856_p4 }
  0x12   :  { %p2859_p7 = pnand %p2858_p6, %p2852_p3 }
  0x14   :  { %2862 = shalt.err (!%p2859_p7)
}
  0x15   :  { %s2937_s21 = smov 128   ;;  %s2938_s22 = smov 8  }
  0x16   :  { %50 = dma.hbm_to_vmem [thread:$0]  %s3198_s3, 4096, %s45_s28, [#allocation7], %s2937_s21, %s2937_s21, %s2938_s22  }
  0x17   :  { %s2863_s27 = scalar_lea.hbm %s3196_s1, 22400 }
  0x18   :  { %p2864_p8 = scmp.ne.s32.totalorder %s3196_s1, %s2863_s27  ;;  %p2867_p9 = scmp.lt.u32.totalorder %s2863_s27, %s3196_s1 }
  0x1a   :  { %p2869_p10 = pnand %p2867_p9, %p2864_p8 }
  0x1c   :  { %2872 = shalt.err (!%p2869_p10)
}
  0x1d   :  { %s2873_s17 = scalar_lea.vmem %s3020_s30, 22400  ;;  %p2878_p12 = scmp.lt.s32.totalorder %s3020_s30, %s3020_s30 }
  0x1e   :  { %p2874_p11 = scmp.ne.s32.totalorder %s3020_s30, %s2873_s17  ;;  %p2879_p13 = scmp.lt.s32.totalorder %s2873_s17, %s2873_s17 }
  0x20   :  { %p2880_p0 = por %p2879_p13, %p2878_p12 }
  0x22   :  { %p2881_p1 = pnand %p2880_p0, %p2874_p11 }
  0x24   :  { %2884 = shalt.err (!%p2881_p1)
}
  0x25   :  { %36 = dma.hbm_to_vmem [thread:$0]  %s3196_s1, 22400, %s3020_s30, [#allocation4], %s2937_s21, %s2937_s21, %s2938_s22  }
  0x26   :  { %s2939_s18 = smov [#allocation8]   ;;  %s2885_s23 = scalar_lea.hbm %s3200_s5, 2048 }
  0x27   :  { %s58_s12 = sshll.u32 %s2939_s18, 4  ;;  %p2886_p2 = scmp.ne.s32.totalorder %s3200_s5, %s2885_s23  ;;  %s59_s12 = int_to_ptr.vmem [resolvable:$true] %s58_s12 }
  0x28   :  { %p2889_p3 = scmp.lt.u32.totalorder %s2885_s23, %s3200_s5 }
  0x2a   :  { %p2891_p4 = pnand %p2889_p3, %p2886_p2 }
  0x2c   :  { %2894 = shalt.err (!%p2891_p4)
}
  0x2d   :  { %s2895_s29 = scalar_lea.vmem %s59_s12, 2048  ;;  %p2900_p6 = scmp.lt.s32.totalorder %s59_s12, %s59_s12 }
  0x2e   :  { %p2896_p5 = scmp.ne.s32.totalorder %s59_s12, %s2895_s29  ;;  %p2901_p7 = scmp.lt.s32.totalorder %s2895_s29, %s2895_s29 }
  0x30   :  { %p2902_p8 = por %p2901_p7, %p2900_p6 }
  0x32   :  { %p2903_p9 = pnand %p2902_p8, %p2896_p5 }
  0x34   :  { %2906 = shalt.err (!%p2903_p9)
}
  0x35   :  { %s2940_s1 = smov 64   ;;  %s2941_s30 = smov 4  }
  0x36   :  { %64 = dma.hbm_to_vmem [thread:$0]  %s3200_s5, 2048, %s59_s12, [#allocation7], %s2940_s1, %s2940_s1, %s2941_s30  }
  0x37   :  { %2929 = dma.done.wait [#allocation4], 22400  }
  0x38   :  { %2930 = vsyncadd [#allocation4], 4294944896 }
  0x39   :  { %2931 = dma.done.wait [#allocation7], 6144  }
  0x3a   :  { %2932 = vsyncadd [#allocation7], 4294961152  ;;  %v2497_v1 = vld [vmem:[#allocation3 + $0x104] ss:$8 sps:$4 sm:$0xff]   ;;  %v2499_v2 = vld [vmem:[#allocation3 + $0x100] ss:$8 sps:$4 sm:$0xff]   ;;  %v99_v12 = vlaneseq }
  0x3b   :  { %1281 = vmatprep.subr.bf16.mxu0 %v2497_v1  ;;  %v2500_v3 = vld [vmem:[#allocation3 + $0x114] ss:$8 sps:$4 sm:$0xff]   ;;  %v2502_v4 = vld [vmem:[#allocation3 + $0x110] ss:$8 sps:$4 sm:$0xff]   ;;  %v2503_v5 = vld [vmem:[#allocation3 + $0x124] ss:$8 sps:$4 sm:$0xff]  }
  0x3c   :  { %1282 = vmatpush1.bf16.msra.mxu0 %v2499_v2  ;;  %v2505_v6 = vld [vmem:[#allocation3 + $0x120] ss:$8 sps:$4 sm:$0xff]   ;;  %v2506_v7 = vld [vmem:[#allocation3 + $0x134] ss:$8 sps:$4 sm:$0xff]   ;;  %v2508_v8 = vld [vmem:[#allocation3 + $0x130] ss:$8 sps:$4 sm:$0xff]  }
  0x3d   :  { %1283 = vmatprep.subr.bf16.mxu0 %v2500_v3  ;;  %v2509_v9 = vld [vmem:[#allocation3 + $0x144] ss:$8 sps:$4 sm:$0xff]   ;;  %v2942_v10 = vmov 1983009808   ;;  %v2511_v13 = vld [vmem:[#allocation3 + $0x140] ss:$8 sps:$4 sm:$0xff]  }
  0x3e   :  { %v97_v11 = vunpack.c.l.s4 %v2942_v10  ;;  %v2512_v14 = vld [vmem:[#allocation3 + $0x154] ss:$8 sps:$4 sm:$0xff]   ;;  %v3064_v16 = vshrl.u32 %v99_v12, 7  ;;  %v2514_v17 = vld [vmem:[#allocation3 + $0x150] ss:$8 sps:$4 sm:$0xff]   ;;  %v3084_v41 = vld [vmem:[%s3195_s0 + $0x8] sm:$0xff] }
  0x3f   :  { %v2515_v18 = vld [vmem:[#allocation3 + $0x164] ss:$8 sps:$4 sm:$0xff]   ;;  %v2517_v22 = vld [vmem:[#allocation3 + $0x160] ss:$8 sps:$4 sm:$0xff]   ;;  %v2518_v23 = vld [vmem:[#allocation3 + $0x174] ss:$8 sps:$4 sm:$0xff]  }
  0x40   :  { %1284 = vmatpush1.bf16.msra.mxu0 %v2502_v4  ;;  %v98_v15 = vunpack.c.0.s8 %v97_v11  ;;  %v3072_v20 = vld [vmem:[%s3195_s0] sm:$0xff]  ;;  %v2520_v26 = vld [vmem:[#allocation3 + $0x170] ss:$8 sps:$4 sm:$0xff]   ;;  %vm1233_vm0 = vcmask 1043456   ;;  %vm1229_vm1 = vcmask 982016   ;;  %vm2945_vm2 = vmmov 0  }
  0x41   :  { %1285 = vmatprep.subr.bf16.mxu0 %v2503_v5  ;;  %v95_v21 = vcombine.high %v3072_v20, %v3072_v20  ;;  %v2521_v27 = vld [vmem:[#allocation3 + $0x184] ss:$8 sps:$4 sm:$0xff]   ;;  %v2523_v29 = vld [vmem:[#allocation3 + $0x180] ss:$8 sps:$4 sm:$0xff]   ;;  %v2524_v30 = vld [vmem:[#allocation3 + $0x194] ss:$8 sps:$4 sm:$0xff]  }
  0x42   :  { %v3067_v19 = vsub.s32 %v98_v15, %v3064_v16  ;;  %v2526_v31 = vld [vmem:[#allocation3 + $0x190] ss:$8 sps:$4 sm:$0xff]   ;;  %v2527_v32 = vld [vmem:[#allocation3 + $0x1a4] ss:$8 sps:$4 sm:$0xff]   ;;  %v2529_v33 = vld [vmem:[#allocation3 + $0x1a0] ss:$8 sps:$4 sm:$0xff]  }
  0x43   :  { %v2530_v34 = vld [vmem:[#allocation3 + $0x1b4] ss:$8 sps:$4 sm:$0xff]   ;;  %v2532_v35 = vld [vmem:[#allocation3 + $0x1b0] ss:$8 sps:$4 sm:$0xff]   ;;  %v2533_v36 = vld [vmem:[#allocation3 + $0x1c4] ss:$8 sps:$4 sm:$0xff]  }
  0x44   :  { %1286 = vmatpush1.bf16.msra.mxu0 %v2505_v6  ;;  %v3077_v24 = vrot.slane %v95_v21, %v3067_v19  ;;  %v2535_v37 = vld [vmem:[#allocation3 + $0x1c0] ss:$8 sps:$4 sm:$0xff]   ;;  %v2536_v38 = vld [vmem:[#allocation3 + $0x1d4] ss:$8 sps:$4 sm:$0xff]   ;;  %v2538_v39 = vld [vmem:[#allocation3 + $0x1d0] ss:$8 sps:$4 sm:$0xff]   ;;  %v3088_v44 = vrot.slane %v3084_v41, %v3067_v19 }
  0x45   :  { %1287 = vmatprep.subr.bf16.mxu0 %v2506_v7  ;;  %v2539_v40 = vld [vmem:[#allocation3 + $0x1e4] ss:$8 sps:$4 sm:$0xff]   ;;  %v2541_v42 = vld [vmem:[#allocation3 + $0x1e0] ss:$8 sps:$4 sm:$0xff]   ;;  %v2542_v46 = vld [vmem:[#allocation3 + $0x1f4] ss:$8 sps:$4 sm:$0xff]  }
  0x46   :  { %v111_v25 = vcombine.high %v3077_v24, %v3077_v24  ;;  %v2618_v43 = vld [vmem:[#allocation3 + $0x4] ss:$8 sps:$4 sm:$0xff]   ;;  %v2620_v45 = vld [vmem:[#allocation3] ss:$8 sps:$4 sm:$0xff]   ;;  %v2624_v47 = vld [vmem:[#allocation3 + $0x14] ss:$8 sps:$4 sm:$0xff]   ;;  %v127_v50 = vcombine.high %v3088_v44, %v3088_v44  ;;  %v158_v54 = vpack.c.bf16 %v3077_v24, %v3077_v24 }
  0x47   :  { %1240 = vmatprep.subr.bf16.mxu1 %v2618_v43  ;;  %v2626_v48 = vld [vmem:[#allocation3 + $0x10] ss:$8 sps:$4 sm:$0xff]   ;;  %v2548_v51 = vld [vmem:[#allocation3 + $0x204] ss:$8 sps:$4 sm:$0xff]   ;;  %v2632_v53 = vld [vmem:[#allocation3 + $0x20] ss:$8 sps:$4 sm:$0xff]  }
  0x48   :  { %1288 = vmatpush1.bf16.msra.mxu0 %v2508_v8  ;;  %v159_v28 = vpack.c.bf16 %v111_v25, %v111_v25  ;;  %1241 = vmatpush1.bf16.msra.mxu1 %v2620_v45  ;;  %v2544_v49 = vld [vmem:[#allocation3 + $0x1f0] ss:$8 sps:$4 sm:$0xff]   ;;  %v2630_v52 = vld [vmem:[#allocation3 + $0x24] ss:$8 sps:$4 sm:$0xff]   ;;  %v2636_v55 = vld [vmem:[#allocation3 + $0x34] ss:$8 sps:$4 sm:$0xff]   ;;  %v161_v57 = vpack.c.bf16 %v127_v50, %v127_v50 }
  0x49   :  { %1289 = vmatprep.subr.bf16.mxu0 %v2509_v9  ;;  %1242 = vmatprep.subr.bf16.mxu1 %v2624_v47  ;;  %v2546_v56 = vld [vmem:[#allocation3 + $0x200] ss:$8 sps:$4 sm:$0xff]   ;;  %v2551_v58 = vld [vmem:[#allocation3 + $0x214] ss:$8 sps:$4 sm:$0xff]   ;;  %v2638_v59 = vld [vmem:[#allocation3 + $0x30] ss:$8 sps:$4 sm:$0xff]  }
  0x4a   :  { %1313 = vmatprep.mubr.bf16.mxu0 %v159_v28  ;;  %v2642_v60 = vld [vmem:[#allocation3 + $0x44] ss:$8 sps:$4 sm:$0xff]   ;;  %v2549_v61 = vld [vmem:[#allocation3 + $0x210] ss:$8 sps:$4 sm:$0xff]   ;;  %v2644_v63 = vld [vmem:[#allocation3 + $0x40] ss:$8 sps:$4 sm:$0xff]  }
  0x4b   :  { %v2554_v62 = vld [vmem:[#allocation3 + $0x224] ss:$8 sps:$4 sm:$0xff]   ;;  %v2648_v0 = vld [vmem:[#allocation3 + $0x54] ss:$8 sps:$4 sm:$0xff]   ;;  %v2552_v1 = vld [vmem:[#allocation3 + $0x220] ss:$8 sps:$4 sm:$0xff]  }
  0x4c   :  { %1290 = vmatpush1.bf16.msra.mxu0 %v2511_v13  ;;  %1243 = vmatpush1.bf16.msra.mxu1 %v2626_v48  ;;  %v2557_v2 = vld [vmem:[#allocation3 + $0x234] ss:$8 sps:$4 sm:$0xff]   ;;  %v2650_v3 = vld [vmem:[#allocation3 + $0x50] ss:$8 sps:$4 sm:$0xff]   ;;  %v2654_v4 = vld [vmem:[#allocation3 + $0x64] ss:$8 sps:$4 sm:$0xff]  }
  0x4d   :  { %1291 = vmatprep.subr.bf16.mxu0 %v2512_v14  ;;  %1244 = vmatprep.subr.bf16.mxu1 %v2630_v52  ;;  %v2555_v5 = vld [vmem:[#allocation3 + $0x230] ss:$8 sps:$4 sm:$0xff]   ;;  %v2560_v6 = vld [vmem:[#allocation3 + $0x244] ss:$8 sps:$4 sm:$0xff]   ;;  %v2656_v7 = vld [vmem:[#allocation3 + $0x60] ss:$8 sps:$4 sm:$0xff]  }
  0x4e   :  { %v2660_v8 = vld [vmem:[#allocation3 + $0x74] ss:$8 sps:$4 sm:$0xff]   ;;  %v2558_v9 = vld [vmem:[#allocation3 + $0x240] ss:$8 sps:$4 sm:$0xff]   ;;  %v2662_v11 = vld [vmem:[#allocation3 + $0x70] ss:$8 sps:$4 sm:$0xff]  }
  0x4f   :  { %v2563_v10 = vld [vmem:[#allocation3 + $0x254] ss:$8 sps:$4 sm:$0xff]   ;;  %v2666_v13 = vld [vmem:[#allocation3 + $0x84] ss:$8 sps:$4 sm:$0xff]   ;;  %v2561_v14 = vld [vmem:[#allocation3 + $0x250] ss:$8 sps:$4 sm:$0xff]  }
  0x50   :  { %1292 = vmatpush1.bf16.msra.mxu0 %v2514_v17  ;;  %1245 = vmatpush1.bf16.msra.mxu1 %v2632_v53  ;;  %v2566_v15 = vld [vmem:[#allocation3 + $0x264] ss:$8 sps:$4 sm:$0xff]   ;;  %v2668_v17 = vld [vmem:[#allocation3 + $0x80] ss:$8 sps:$4 sm:$0xff]   ;;  %v2567_v25 = vld [vmem:[#allocation3 + $0x270] ss:$8 sps:$4 sm:$0xff]  }
  0x51   :  { %1293 = vmatprep.subr.bf16.mxu0 %v2515_v18  ;;  %1246 = vmatprep.subr.bf16.mxu1 %v2636_v55  ;;  %v2673_v18 = vld [vmem:[#allocation3 + $0x94] ss:$8 sps:$4 sm:$0xff]   ;;  %v2564_v21 = vld [vmem:[#allocation3 + $0x260] ss:$8 sps:$4 sm:$0xff]   ;;  %v2679_v24 = vld [vmem:[#allocation3 + $0xa4] ss:$8 sps:$4 sm:$0xff]   ;;  %v112_v55 = vcombine.high %v3084_v41, %v3084_v41 }
  0x52   :  { %v2681_v28 = vld [vmem:[#allocation3 + $0xa0] ss:$8 sps:$4 sm:$0xff]   ;;  %v2703_v43 = vld [vmem:[#allocation3 + $0xe4] ss:$8 sps:$4 sm:$0xff]   ;;  %v2579_v45 = vld [vmem:[#allocation3 + $0x2b0] ss:$8 sps:$4 sm:$0xff]  }
  0x53   :  { %v2705_v47 = vld [vmem:[#allocation3 + $0xe0] ss:$8 sps:$4 sm:$0xff]   ;;  %v2709_v48 = vld [vmem:[#allocation3 + $0xf4] ss:$8 sps:$4 sm:$0xff]   ;;  %v2717_v52 = vld [vmem:[#allocation3 + $0x504] ss:$8 sps:$4 sm:$0xff]  }
  0x54   :  { %1294 = vmatpush1.bf16.msra.mxu0 %v2517_v22  ;;  %1247 = vmatpush1.bf16.msra.mxu1 %v2638_v59  ;;  %v2569_v22 = vld [vmem:[#allocation3 + $0x274] ss:$8 sps:$4 sm:$0xff]   ;;  %v2585_v53 = vld [vmem:[#allocation3 + $0x2d0] ss:$8 sps:$4 sm:$0xff]   ;;  %v2588_v59 = vld [vmem:[#allocation3 + $0x2e0] ss:$8 sps:$4 sm:$0xff]  }
  0x55   :  { %1295 = vmatprep.subr.bf16.mxu0 %v2518_v23  ;;  %1248 = vmatprep.subr.bf16.mxu1 %v2642_v60  ;;  %v2675_v23 = vld [vmem:[#allocation3 + $0x90] ss:$8 sps:$4 sm:$0xff]   ;;  %v2587_v50 = vld [vmem:[#allocation3 + $0x2d4] ss:$8 sps:$4 sm:$0xff]   ;;  %v2729_v41 = vld [vmem:[#allocation3 + $0x524] ss:$8 sps:$4 sm:$0xff]  }
  0x56   :  { %v2593_v60 = vld [vmem:[#allocation3 + $0x2f4] ss:$8 sps:$4 sm:$0xff]   ;;  %vm2051_vm3 = vcmask 261120   ;;  %vm2104_vm4 = vcmask 254976  }
  0x58   :  { %1296 = vmatpush1.bf16.msra.mxu0 %v2520_v26  ;;  %1249 = vmatpush1.bf16.msra.mxu1 %v2644_v63  ;;  %v3096_v26 = vrot.slane %v3072_v20, %v3067_v19  ;;  %v2691_v20 = vld [vmem:[#allocation3 + $0xc4] ss:$8 sps:$4 sm:$0xff]   ;;  %v2591_v63 = vld [vmem:[#allocation3 + $0x2f0] ss:$8 sps:$4 sm:$0xff]  }
  0x59   :  { %1297 = vmatprep.subr.bf16.mxu0 %v2521_v27  ;;  %1250 = vmatprep.subr.bf16.mxu1 %v2648_v0  ;;  %v2572_v27 = vld [vmem:[#allocation3 + $0x284] ss:$8 sps:$4 sm:$0xff]  }
  0x5a   :  { %v2596_v0 = vld [vmem:[#allocation3 + $0x304] ss:$8 sps:$4 sm:$0xff]  }
  0x5c   :  { %1298 = vmatpush1.bf16.msra.mxu0 %v2523_v29  ;;  %1251 = vmatpush1.bf16.msra.mxu1 %v2650_v3  ;;  %v110_v29 = vcombine.high %v3096_v26, %v3096_v26  ;;  %v2735_v3 = vld [vmem:[#allocation3 + $0x534] ss:$8 sps:$4 sm:$0xff]  }
  0x5d   :  { %1299 = vmatprep.subr.bf16.mxu0 %v2524_v30  ;;  %1252 = vmatprep.subr.bf16.mxu1 %v2654_v4  ;;  %v2685_v30 = vld [vmem:[#allocation3 + $0xb4] ss:$8 sps:$4 sm:$0xff]   ;;  %v2594_v4 = vld [vmem:[#allocation3 + $0x300] ss:$8 sps:$4 sm:$0xff]  }
  0x60   :  { %1300 = vmatpush1.bf16.msra.mxu0 %v2526_v31  ;;  %1253 = vmatpush1.bf16.msra.mxu1 %v2656_v7  ;;  %v2570_v31 = vld [vmem:[#allocation3 + $0x280] ss:$8 sps:$4 sm:$0xff]   ;;  %v2599_v7 = vld [vmem:[#allocation3 + $0x314] ss:$8 sps:$4 sm:$0xff]  }
  0x61   :  { %1301 = vmatprep.subr.bf16.mxu0 %v2527_v32  ;;  %1254 = vmatprep.subr.bf16.mxu1 %v2660_v8  ;;  %v157_v32 = vpack.c.bf16 %v110_v29, %v110_v29 }
  0x63   :  { %1272 = vmatprep.mubr.bf16.mxu1 %v157_v32 }
  0x64   :  { %1302 = vmatpush1.bf16.msra.mxu0 %v2529_v33  ;;  %1255 = vmatpush1.bf16.msra.mxu1 %v2662_v11  ;;  %v2575_v33 = vld [vmem:[#allocation3 + $0x294] ss:$8 sps:$4 sm:$0xff]   ;;  %v2741_v11 = vld [vmem:[#allocation3 + $0x544] ss:$8 sps:$4 sm:$0xff]  }
  0x65   :  { %1303 = vmatprep.subr.bf16.mxu0 %v2530_v34  ;;  %1256 = vmatprep.subr.bf16.mxu1 %v2666_v13  ;;  %v2687_v34 = vld [vmem:[#allocation3 + $0xb0] ss:$8 sps:$4 sm:$0xff]  }
  0x68   :  { %1304 = vmatpush1.bf16.msra.mxu0 %v2532_v35  ;;  %1257 = vmatpush1.bf16.msra.mxu1 %v2668_v17  ;;  %v2573_v35 = vld [vmem:[#allocation3 + $0x290] ss:$8 sps:$4 sm:$0xff]   ;;  %v2739_v17 = vld [vmem:[#allocation3 + $0x540] ss:$8 sps:$4 sm:$0xff]  }
  0x69   :  { %1305 = vmatprep.subr.bf16.mxu0 %v2533_v36  ;;  %1258 = vmatprep.subr.bf16.mxu1 %v2673_v18  ;;  %v2578_v36 = vld [vmem:[#allocation3 + $0x2a4] ss:$8 sps:$4 sm:$0xff]   ;;  %v2605_v18 = vld [vmem:[#allocation3 + $0x334] ss:$8 sps:$4 sm:$0xff]  }
  0x6c   :  { %1306 = vmatpush1.bf16.msra.mxu0 %v2535_v37  ;;  %1259 = vmatpush1.bf16.msra.mxu1 %v2675_v23  ;;  %v2693_v37 = vld [vmem:[#allocation3 + $0xc0] ss:$8 sps:$4 sm:$0xff]   ;;  %v2745_v23 = vld [vmem:[#allocation3 + $0x550] ss:$8 sps:$4 sm:$0xff]  }
  0x6d   :  { %1307 = vmatprep.subr.bf16.mxu0 %v2536_v38  ;;  %1260 = vmatprep.subr.bf16.mxu1 %v2679_v24  ;;  %v2697_v38 = vld [vmem:[#allocation3 + $0xd4] ss:$8 sps:$4 sm:$0xff]  }
  0x6e   :  { %v3115_v24 = vld [vmem:[%s3195_s0 + $0x10] sm:$0x3f] }
  0x6f   :  { %v129_v29 = vcombine.high %v3115_v24, %v3115_v24 }
  0x70   :  { %1308 = vmatpush1.bf16.msra.mxu0 %v2538_v39  ;;  %1261 = vmatpush1.bf16.msra.mxu1 %v2681_v28  ;;  %v2576_v39 = vld [vmem:[#allocation3 + $0x2a0] ss:$8 sps:$4 sm:$0xff]  }
  0x71   :  { %1309 = vmatprep.subr.bf16.mxu0 %v2539_v40  ;;  %1262 = vmatprep.subr.bf16.mxu1 %v2685_v30  ;;  %v2581_v40 = vld [vmem:[#allocation3 + $0x2b4] ss:$8 sps:$4 sm:$0xff]   ;;  %v2751_v28 = vld [vmem:[#allocation3 + $0x560] ss:$8 sps:$4 sm:$0xff]  }
  0x72   :  { %v2606_v30 = vld [vmem:[#allocation3 + $0x340] ss:$8 sps:$4 sm:$0xff]  }
  0x74   :  { %1310 = vmatpush1.bf16.msra.mxu0 %v2541_v42  ;;  %1263 = vmatpush1.bf16.msra.mxu1 %v2687_v34  ;;  %v2699_v42 = vld [vmem:[#allocation3 + $0xd0] ss:$8 sps:$4 sm:$0xff]   ;;  %v2765_v34 = vld [vmem:[#allocation6 + $0x4] ss:$8 sps:$4 sm:$0xff]  }
  0x75   :  { %1311 = vmatprep.subr.bf16.mxu0 %v2542_v46  ;;  %1264 = vmatprep.subr.bf16.mxu1 %v2691_v20  ;;  %v2584_v46 = vld [vmem:[#allocation3 + $0x2c4] ss:$8 sps:$4 sm:$0xff]   ;;  %v2609_v20 = vld [vmem:[#allocation3 + $0x350] ss:$8 sps:$4 sm:$0xff]  }
  0x78   :  { %1312 = vmatpush1.bf16.msra.mxu0 %v2544_v49  ;;  %1265 = vmatpush1.bf16.msra.mxu1 %v2693_v37  ;;  %v2582_v49 = vld [vmem:[#allocation3 + $0x2c0] ss:$8 sps:$4 sm:$0xff]  }
  0x79   :  { %1322 = vmatprep.subr.bf16.mxu0 %v2548_v51  ;;  %1266 = vmatprep.subr.bf16.mxu1 %v2697_v38  ;;  %v2711_v51 = vld [vmem:[#allocation3 + $0xf0] ss:$8 sps:$4 sm:$0xff]   ;;  %v2768_v38 = vld [vmem:[#allocation6 + $0x14] ss:$8 sps:$4 sm:$0xff]  }
  0x7b   :  { %1314 = vmatmul.mubr.bf16.vlgmr.msra.gmra.mrb[0].mxu0 %v158_v54  ;;  %v2590_v54 = vld [vmem:[#allocation3 + $0x2e4] ss:$8 sps:$4 sm:$0xff]  }
  0x7c   :  { %1323 = vmatpush1.bf16.msra.mxu0 %v2546_v56  ;;  %1354 = vmatprep.mubr.bf16.mxu0 %v161_v57  ;;  %v2715_v56 = vld [vmem:[#allocation3 + $0x500] ss:$8 sps:$4 sm:$0xff]   ;;  %v156_v57 = vpack.c.bf16 %v3096_v26, %v3096_v26  ;;  %v2603_v26 = vld [vmem:[#allocation3 + $0x330] ss:$8 sps:$4 sm:$0xff]  }
  0x7d   :  { %1324 = vmatprep.subr.bf16.mxu0 %v2551_v58  ;;  %1267 = vmatpush1.bf16.msra.mxu1 %v2699_v42  ;;  %v2723_v58 = vld [vmem:[#allocation3 + $0x514] ss:$8 sps:$4 sm:$0xff]   ;;  %v2766_v42 = vld [vmem:[#allocation6 + $0x10] ss:$8 sps:$4 sm:$0xff]  }
  0x7e   :  { %1268 = vmatprep.subr.bf16.mxu1 %v2703_v43  ;;  %v2771_v43 = vld [vmem:[#allocation6 + $0x24] ss:$8 sps:$4 sm:$0xff]  }
  0x80   :  { %1325 = vmatpush1.bf16.msra.mxu0 %v2549_v61  ;;  %v3105_v61 = vrot.slane %v112_v55, %v3067_v19  ;;  %v2775_v55 = vld [vmem:[#allocation6 + $0x40] ss:$8 sps:$4 sm:$0xff]  }
  0x81   :  { %1326 = vmatprep.subr.bf16.mxu0 %v2554_v62  ;;  %1269 = vmatpush1.bf16.msra.mxu1 %v2705_v47  ;;  %v2721_v62 = vld [vmem:[#allocation3 + $0x510] ss:$8 sps:$4 sm:$0xff]  }
  0x82   :  { %1270 = vmatprep.subr.bf16.mxu1 %v2709_v48  ;;  %v2769_v47 = vld [vmem:[#allocation6 + $0x20] ss:$8 sps:$4 sm:$0xff]   ;;  %v2774_v48 = vld [vmem:[#allocation6 + $0x34] ss:$8 sps:$4 sm:$0xff]  }
  0x84   :  { %1327 = vmatpush1.bf16.msra.mxu0 %v2552_v1  ;;  %v128_v1 = vcombine.high %v3105_v61, %v3105_v61 }
  0x85   :  { %1328 = vmatprep.subr.bf16.mxu0 %v2557_v2  ;;  %1271 = vmatpush1.bf16.msra.mxu1 %v2711_v51  ;;  %v2727_v2 = vld [vmem:[#allocation3 + $0x520] ss:$8 sps:$4 sm:$0xff]  }
  0x86   :  { %1445 = vmatprep.subr.bf16.mxu1 %v2717_v52  ;;  %v163_v8 = vpack.c.bf16 %v128_v1, %v128_v1  ;;  %v2772_v51 = vld [vmem:[#allocation6 + $0x30] ss:$8 sps:$4 sm:$0xff]   ;;  %v2777_v52 = vld [vmem:[#allocation6 + $0x44] ss:$8 sps:$4 sm:$0xff]  }
  0x87   :  { %v2659_v1 = vld [vmem:[#allocation3 + $0x3e4] ss:$8 sps:$4 sm:$0xff]  }
  0x88   :  { %1329 = vmatpush1.bf16.msra.mxu0 %v2555_v5  ;;  %1273 = vmatmul.mubr.bf16.vlgmr.msra.gmra.mrb[0].mxu1 %v156_v57  ;;  %v341_v5 = vld [vmem:[#allocation3 + $0x570] sm:$0xff]  ;;  %v2633_v57 = vld [vmem:[#allocation3 + $0x3a0] ss:$8 sps:$4 sm:$0xff]  }
  0x89   :  { %1330 = vmatprep.subr.bf16.mxu0 %v2560_v6  ;;  %1446 = vmatpush1.bf16.msra.mxu1 %v2715_v56  ;;  %v160_v6 = vpack.c.bf16 %v3088_v44, %v3088_v44  ;;  %v2331_v13 = vcombine.low %v341_v5, %v341_v5  ;;  %v2602_v44 = vld [vmem:[#allocation3 + $0x324] ss:$8 sps:$4 sm:$0xff]   ;;  %v2332_v32 = vcombine.high %v341_v5, %v341_v5  ;;  %v2663_v5 = vld [vmem:[#allocation3 + $0x3f0] ss:$8 sps:$4 sm:$0xff]  }
  0x8a   :  { %1447 = vmatprep.subr.bf16.mxu1 %v2723_v58  ;;  %v2780_v56 = vld [vmem:[#allocation6 + $0x54] ss:$8 sps:$4 sm:$0xff]  }
  0x8b   :  { %v2641_v58 = vld [vmem:[#allocation3 + $0x3b4] ss:$8 sps:$4 sm:$0xff]  }
  0x8c   :  { %1331 = vmatpush1.bf16.msra.mxu0 %v2558_v9  ;;  %v2733_v9 = vld [vmem:[#allocation3 + $0x530] ss:$8 sps:$4 sm:$0xff]  }
  0x8d   :  { %1332 = vmatprep.subr.bf16.mxu0 %v2563_v10  ;;  %1448 = vmatpush1.bf16.msra.mxu1 %v2721_v62  ;;  %v2943_v10 = vmov 0   ;;  %v2647_v62 = vld [vmem:[#allocation3 + $0x3c4] ss:$8 sps:$4 sm:$0xff]  }
  0x8e   :  { %1449 = vmatprep.subr.bf16.mxu1 %v2729_v41  ;;  %1477 = vmatprep.mubr.bf16.mxu1 %v2943_v10  ;;  %v2653_v41 = vld [vmem:[#allocation3 + $0x3d4] ss:$8 sps:$4 sm:$0xff]  }
  0x8f   :  { %2491 = vset.pattern.permute.xlu0 %v2943_v10 }
  0x90   :  { %1333 = vmatpush1.bf16.msra.mxu0 %v2561_v14  ;;  %v2597_v14 = vld [vmem:[#allocation3 + $0x310] ss:$8 sps:$4 sm:$0xff]  }
  0x91   :  { %1334 = vmatprep.subr.bf16.mxu0 %v2566_v15  ;;  %1450 = vmatpush1.bf16.msra.mxu1 %v2727_v2  ;;  %v2600_v15 = vld [vmem:[#allocation3 + $0x320] ss:$8 sps:$4 sm:$0xff]  }
  0x92   :  { %1451 = vmatprep.subr.bf16.mxu1 %v2735_v3  ;;  %v2657_v2 = vld [vmem:[#allocation3 + $0x3e0] ss:$8 sps:$4 sm:$0xff]   ;;  %v3124_v3 = vrot.slane %v3115_v24, %v3067_v19 }
  0x93   :  { %v2784_v24 = vld [vmem:[#allocation6 + $0x70] ss:$8 sps:$4 sm:$0xff]  }
  0x94   :  { %1335 = vmatpush1.bf16.msra.mxu0 %v2564_v21  ;;  %v2747_v21 = vld [vmem:[#allocation3 + $0x554] ss:$8 sps:$4 sm:$0xff]  }
  0x95   :  { %1336 = vmatprep.subr.bf16.mxu0 %v2569_v22  ;;  %1452 = vmatpush1.bf16.msra.mxu1 %v2733_v9  ;;  %v1235_v22 = vsel %vm1233_vm0, %v2331_v13, 0  ;;  %v2670_v9 = vld [vmem:[#allocation3 + $0x400] ss:$8 sps:$4 sm:$0xff]   ;;  %v2684_v13 = vld [vmem:[#allocation3 + $0x424] ss:$8 sps:$4 sm:$0xff]  }
  0x96   :  { %1453 = vmatprep.subr.bf16.mxu1 %v2741_v11  ;;  %v2678_v11 = vld [vmem:[#allocation3 + $0x414] ss:$8 sps:$4 sm:$0xff]  }
  0x98   :  { %1337 = vmatpush1.bf16.msra.mxu0 %v2567_v25  ;;  %v2753_v25 = vld [vmem:[#allocation3 + $0x564] ss:$8 sps:$4 sm:$0xff]  }
  0x99   :  { %1338 = vmatprep.subr.bf16.mxu0 %v2572_v27  ;;  %1454 = vmatpush1.bf16.msra.mxu1 %v2739_v17  ;;  %v2608_v27 = vld [vmem:[#allocation3 + $0x344] ss:$8 sps:$4 sm:$0xff]  }
  0x9a   :  { %1455 = vmatprep.subr.bf16.mxu1 %v2747_v21  ;;  %v2696_v17 = vld [vmem:[#allocation3 + $0x444] ss:$8 sps:$4 sm:$0xff]   ;;  %v2694_v21 = vld [vmem:[#allocation3 + $0x440] ss:$8 sps:$4 sm:$0xff]  }
  0x9c   :  { %1339 = vmatpush1.bf16.msra.mxu0 %v2570_v31  ;;  %v2611_v31 = vld [vmem:[#allocation3 + $0x354] ss:$8 sps:$4 sm:$0xff]  }
  0x9d   :  { %1340 = vmatprep.subr.bf16.mxu0 %v2575_v33  ;;  %1456 = vmatpush1.bf16.msra.mxu1 %v2745_v23  ;;  %v143_v33 = vrot.slane %v129_v29, %v3067_v19  ;;  %v2676_v19 = vld [vmem:[#allocation3 + $0x410] ss:$8 sps:$4 sm:$0xff]   ;;  %v2702_v23 = vld [vmem:[#allocation3 + $0x454] ss:$8 sps:$4 sm:$0xff]  }
  0x9e   :  { %1457 = vmatprep.subr.bf16.mxu1 %v2753_v25  ;;  %v2789_v25 = vld [vmem:[#allocation6 + $0x84] ss:$8 sps:$4 sm:$0xff]   ;;  %v2792_v29 = vld [vmem:[#allocation6 + $0x94] ss:$8 sps:$4 sm:$0xff]  }
  0x9f   :  { %v166_v37 = vpack.c.bf16 %v143_v33, %v143_v33  ;;  %v2795_v33 = vld [vmem:[#allocation6 + $0xa4] ss:$8 sps:$4 sm:$0xff]  }
  0xa0   :  { %1341 = vmatpush1.bf16.msra.mxu0 %v2573_v35  ;;  %v2614_v35 = vld [vmem:[#allocation3 + $0x364] ss:$8 sps:$4 sm:$0xff]  }
  0xa1   :  { %1342 = vmatprep.subr.bf16.mxu0 %v2578_v36  ;;  %1458 = vmatpush1.bf16.msra.mxu1 %v2751_v28  ;;  %v2763_v36 = vld [vmem:[#allocation6] ss:$8 sps:$4 sm:$0xff]  }
  0xa2   :  { %2333 = vmatprep.subr.msk.bf16.mxu1 %vm1233_vm0, %v2332_v32  ;;  %v2787_v28 = vld [vmem:[#allocation6 + $0x80] ss:$8 sps:$4 sm:$0xff]   ;;  %v2790_v32 = vld [vmem:[#allocation6 + $0x90] ss:$8 sps:$4 sm:$0xff]  }
  0xa4   :  { %1343 = vmatpush1.bf16.msra.mxu0 %v2576_v39  ;;  %v2612_v39 = vld [vmem:[#allocation3 + $0x360] ss:$8 sps:$4 sm:$0xff]  }
  0xa5   :  { %1344 = vmatprep.subr.bf16.mxu0 %v2581_v40  ;;  %1460 = vmatpush1.bf16.msra.mxu1 %v1235_v22  ;;  %v2617_v40 = vld [vmem:[#allocation3 + $0x374] ss:$8 sps:$4 sm:$0xff]  }
  0xa6   :  { %1694 = vmatprep.subr.bf16.mxu1 %v2765_v34  ;;  %v2786_v22 = vld [vmem:[#allocation6 + $0x74] ss:$8 sps:$4 sm:$0xff]   ;;  %v2712_v34 = vld [vmem:[#allocation3 + $0x470] ss:$8 sps:$4 sm:$0xff]  }
  0xa8   :  { %1345 = vmatpush1.bf16.msra.mxu0 %v2579_v45  ;;  %2334 = vmatmul.mubr.msk.bf16.vlgmr.msra.gmra.mrb[4].mxu1 %vm1229_vm1, %v166_v37  ;;  %v2615_v45 = vld [vmem:[#allocation3 + $0x370] ss:$8 sps:$4 sm:$0xff]   ;;  %v2718_v37 = vld [vmem:[#allocation3 + $0x480] ss:$8 sps:$4 sm:$0xff]  }
  0xa9   :  { %1346 = vmatprep.subr.bf16.mxu0 %v2584_v46  ;;  %1695 = vmatpush1.bf16.msra.mxu1 %v2763_v36  ;;  %v2623_v46 = vld [vmem:[#allocation3 + $0x384] ss:$8 sps:$4 sm:$0xff]  }
  0xaa   :  { %1696 = vmatprep.subr.bf16.mxu1 %v2768_v38  ;;  %v2798_v36 = vld [vmem:[#allocation6 + $0xb4] ss:$8 sps:$4 sm:$0xff]  }
  0xab   :  { %v2726_v38 = vld [vmem:[#allocation3 + $0x494] ss:$8 sps:$4 sm:$0xff]  }
  0xac   :  { %1347 = vmatpush1.bf16.msra.mxu0 %v2582_v49  ;;  %v2621_v49 = vld [vmem:[#allocation3 + $0x380] ss:$8 sps:$4 sm:$0xff]  }
  0xad   :  { %1348 = vmatprep.subr.bf16.mxu0 %v2587_v50  ;;  %1697 = vmatpush1.bf16.msra.mxu1 %v2766_v42  ;;  %v2629_v50 = vld [vmem:[#allocation3 + $0x394] ss:$8 sps:$4 sm:$0xff]   ;;  %v2724_v42 = vld [vmem:[#allocation3 + $0x490] ss:$8 sps:$4 sm:$0xff]  }
  0xae   :  { %1698 = vmatprep.subr.bf16.mxu1 %v2771_v43  ;;  %v2732_v43 = vld [vmem:[#allocation3 + $0x4a4] ss:$8 sps:$4 sm:$0xff]  }
  0xb0   :  { %1349 = vmatpush1.bf16.msra.mxu0 %v2585_v53  ;;  %v2627_v53 = vld [vmem:[#allocation3 + $0x390] ss:$8 sps:$4 sm:$0xff]  }
  0xb1   :  { %1350 = vmatprep.subr.bf16.mxu0 %v2590_v54  ;;  %1699 = vmatpush1.bf16.msra.mxu1 %v2769_v47  ;;  %v2635_v54 = vld [vmem:[#allocation3 + $0x3a4] ss:$8 sps:$4 sm:$0xff]   ;;  %v2738_v47 = vld [vmem:[#allocation3 + $0x4b4] ss:$8 sps:$4 sm:$0xff]  }
  0xb2   :  { %1700 = vmatprep.subr.bf16.mxu1 %v2774_v48  ;;  %v2736_v48 = vld [vmem:[#allocation3 + $0x4b0] ss:$8 sps:$4 sm:$0xff]  }
  0xb4   :  { %1351 = vmatpush1.bf16.msra.mxu0 %v2588_v59  ;;  %v2778_v59 = vld [vmem:[#allocation6 + $0x50] ss:$8 sps:$4 sm:$0xff]  }
  0xb5   :  { %1352 = vmatprep.subr.bf16.mxu0 %v2593_v60  ;;  %1701 = vmatpush1.bf16.msra.mxu1 %v2772_v51  ;;  %v2639_v60 = vld [vmem:[#allocation3 + $0x3b0] ss:$8 sps:$4 sm:$0xff]   ;;  %v2744_v51 = vld [vmem:[#allocation3 + $0x4c4] ss:$8 sps:$4 sm:$0xff]  }
  0xb6   :  { %1702 = vmatprep.subr.bf16.mxu1 %v2777_v52  ;;  %v2742_v52 = vld [vmem:[#allocation3 + $0x4c0] ss:$8 sps:$4 sm:$0xff]  }
  0xb8   :  { %1353 = vmatpush1.bf16.msra.mxu0 %v2591_v63  ;;  %v2645_v63 = vld [vmem:[#allocation3 + $0x3c0] ss:$8 sps:$4 sm:$0xff]  }
  0xb9   :  { %1363 = vmatprep.subr.bf16.mxu0 %v2596_v0  ;;  %1703 = vmatpush1.bf16.msra.mxu1 %v2775_v55  ;;  %v2651_v0 = vld [vmem:[#allocation3 + $0x3d0] ss:$8 sps:$4 sm:$0xff]   ;;  %v2756_v55 = vld [vmem:[#allocation3 + $0x4e4] ss:$8 sps:$4 sm:$0xff]  }
  0xba   :  { %1704 = vmatprep.subr.bf16.mxu1 %v2780_v56  ;;  %v2754_v56 = vld [vmem:[#allocation3 + $0x4e0] ss:$8 sps:$4 sm:$0xff]  }
  0xbb   :  { %1355 = vmatmul.mubr.bf16.vlgmr.msra.gmra.mrb[0].mxu0 %v160_v6  ;;  %v144_v6 = vcombine.high %v3124_v3, %v3124_v3 }
  0xbc   :  { %1364 = vmatpush1.bf16.msra.mxu0 %v2594_v4  ;;  %1395 = vmatprep.mubr.bf16.mxu0 %v163_v8  ;;  %v2665_v4 = vld [vmem:[#allocation3 + $0x3f4] ss:$8 sps:$4 sm:$0xff]   ;;  %v162_v8 = vpack.c.bf16 %v3105_v61, %v3105_v61  ;;  %v2781_v61 = vld [vmem:[#allocation6 + $0x60] ss:$8 sps:$4 sm:$0xff]  }
  0xbd   :  { %1365 = vmatprep.subr.bf16.mxu0 %v2599_v7  ;;  %1705 = vmatpush1.bf16.msra.mxu1 %v2778_v59  ;;  %v2672_v7 = vld [vmem:[#allocation3 + $0x404] ss:$8 sps:$4 sm:$0xff]   ;;  %v165_v10 = vpack.c.bf16 %v144_v6, %v144_v6  ;;  %v164_v59 = vpack.c.bf16 %v3124_v3, %v3124_v3 }
  0xc0   :  { %1366 = vmatpush1.bf16.msra.mxu0 %v2597_v14  ;;  %v2682_v14 = vld [vmem:[#allocation3 + $0x420] ss:$8 sps:$4 sm:$0xff]  }
  0xc1   :  { %1367 = vmatprep.subr.bf16.mxu0 %v2602_v44  ;;  %v2690_v44 = vld [vmem:[#allocation3 + $0x434] ss:$8 sps:$4 sm:$0xff]  }
  0xc4   :  { %1368 = vmatpush1.bf16.msra.mxu0 %v2600_v15  ;;  %v2688_v15 = vld [vmem:[#allocation3 + $0x430] ss:$8 sps:$4 sm:$0xff]  }
  0xc5   :  { %1369 = vmatprep.subr.bf16.mxu0 %v2605_v18  ;;  %v2783_v18 = vld [vmem:[#allocation6 + $0x64] ss:$8 sps:$4 sm:$0xff]  }
  0xc6   :  { %1706 = vmatprep.subr.bf16.mxu1 %v2783_v18 }
  0xc7   :  { %1707 = vmatpush1.bf16.msra.mxu1 %v2781_v61 }
  0xc8   :  { %1370 = vmatpush1.bf16.msra.mxu0 %v2603_v26  ;;  %1708 = vmatprep.subr.bf16.mxu1 %v2786_v22  ;;  %v2700_v26 = vld [vmem:[#allocation3 + $0x450] ss:$8 sps:$4 sm:$0xff]  }
  0xc9   :  { %1371 = vmatprep.subr.bf16.mxu0 %v2608_v27  ;;  %v2708_v27 = vld [vmem:[#allocation3 + $0x464] ss:$8 sps:$4 sm:$0xff]  }
  0xcb   :  { %1709 = vmatpush1.bf16.msra.mxu1 %v2784_v24 }
  0xcc   :  { %1372 = vmatpush1.bf16.msra.mxu0 %v2606_v30  ;;  %1710 = vmatprep.subr.bf16.mxu1 %v2789_v25  ;;  %v2706_v30 = vld [vmem:[#allocation3 + $0x460] ss:$8 sps:$4 sm:$0xff]  }
  0xcd   :  { %1373 = vmatprep.subr.bf16.mxu0 %v2611_v31  ;;  %v2714_v31 = vld [vmem:[#allocation3 + $0x474] ss:$8 sps:$4 sm:$0xff]  }
  0xcf   :  { %1711 = vmatpush1.bf16.msra.mxu1 %v2787_v28  ;;  %v2812_v28 = vld [vmem:[#allocation8] sm:$0xff]  }
  0xd0   :  { %1374 = vmatpush1.bf16.msra.mxu0 %v2609_v20  ;;  %1712 = vmatprep.subr.bf16.mxu1 %v2792_v29  ;;  %v2720_v20 = vld [vmem:[#allocation3 + $0x484] ss:$8 sps:$4 sm:$0xff]  }
  0xd1   :  { %1375 = vmatprep.subr.bf16.mxu0 %v2614_v35  ;;  %v2793_v35 = vld [vmem:[#allocation6 + $0xa0] ss:$8 sps:$4 sm:$0xff]  }
  0xd3   :  { %1713 = vmatpush1.bf16.msra.mxu1 %v2790_v32  ;;  %v2816_v32 = vld [vmem:[#allocation8 + $0x10] sm:$0xff]  }
  0xd4   :  { %1376 = vmatpush1.bf16.msra.mxu0 %v2612_v39  ;;  %1714 = vmatprep.subr.bf16.mxu1 %v2795_v33  ;;  %v2796_v39 = vld [vmem:[#allocation6 + $0xb0] ss:$8 sps:$4 sm:$0xff]  }
  0xd5   :  { %1377 = vmatprep.subr.bf16.mxu0 %v2617_v40  ;;  %v2801_v40 = vld [vmem:[#allocation6 + $0xc4] ss:$8 sps:$4 sm:$0xff]   ;;  %v2817_v33 = vld [vmem:[#allocation8 + $0x58] sm:$0xff]  }
  0xd7   :  { %1715 = vmatpush1.bf16.msra.mxu1 %v2793_v35  ;;  %v2820_v35 = vld [vmem:[#allocation8 + $0x20] sm:$0xff]  }
  0xd8   :  { %1378 = vmatpush1.bf16.msra.mxu0 %v2615_v45  ;;  %1716 = vmatprep.subr.bf16.mxu1 %v2798_v36  ;;  %v2799_v45 = vld [vmem:[#allocation6 + $0xc0] ss:$8 sps:$4 sm:$0xff]  }
  0xd9   :  { %1379 = vmatprep.subr.bf16.mxu0 %v2623_v46  ;;  %v2730_v46 = vld [vmem:[#allocation3 + $0x4a0] ss:$8 sps:$4 sm:$0xff]  }
  0xda   :  { %v2821_v36 = vld [vmem:[#allocation8 + $0x68] sm:$0xff]  }
  0xdb   :  { %1717 = vmatpush1.bf16.msra.mxu1 %v2796_v39  ;;  %v2824_v39 = vld [vmem:[#allocation8 + $0x30] sm:$0xff]  }
  0xdc   :  { %1380 = vmatpush1.bf16.msra.mxu0 %v2621_v49  ;;  %1718 = vmatprep.subr.bf16.mxu1 %v2801_v40  ;;  %v2802_v49 = vld [vmem:[#allocation6 + $0xd0] ss:$8 sps:$4 sm:$0xff]  }
  0xdd   :  { %1381 = vmatprep.subr.bf16.mxu0 %v2629_v50  ;;  %v2804_v50 = vld [vmem:[#allocation6 + $0xd4] ss:$8 sps:$4 sm:$0xff]  }
  0xde   :  { %v2825_v40 = vld [vmem:[#allocation8 + $0x78] sm:$0xff]  }
  0xdf   :  { %1719 = vmatpush1.bf16.msra.mxu1 %v2799_v45  ;;  %v1522_v45 = vld [vmem:[%s3199_s4] sm:$0x3] }
  0xe0   :  { %1382 = vmatpush1.bf16.msra.mxu0 %v2627_v53  ;;  %1720 = vmatprep.subr.bf16.mxu1 %v2804_v50  ;;  %v2750_v53 = vld [vmem:[#allocation3 + $0x4d4] ss:$8 sps:$4 sm:$0xff]  }
  0xe1   :  { %1383 = vmatprep.subr.bf16.mxu0 %v2635_v54  ;;  %v2748_v54 = vld [vmem:[#allocation3 + $0x4d0] ss:$8 sps:$4 sm:$0xff]  }
  0xe3   :  { %1721 = vmatpush1.bf16.msra.mxu1 %v2802_v49 }
  0xe4   :  { %1384 = vmatpush1.bf16.msra.mxu0 %v2633_v57  ;;  %v2760_v57 = vld [vmem:[#allocation3 + $0x4f4] ss:$8 sps:$4 sm:$0xff]  }
  0xe5   :  { %1385 = vmatprep.subr.bf16.mxu0 %v2641_v58  ;;  %v2758_v58 = vld [vmem:[#allocation3 + $0x4f0] ss:$8 sps:$4 sm:$0xff]  }
  0xe8   :  { %1386 = vmatpush1.bf16.msra.mxu0 %v2639_v60 }
  0xe9   :  { %1387 = vmatprep.subr.bf16.mxu0 %v2647_v62 }
  0xec   :  { %1388 = vmatpush1.bf16.msra.mxu0 %v2645_v63 }
  0xed   :  { %1389 = vmatprep.subr.bf16.mxu0 %v2653_v41 }
  0xf0   :  { %1390 = vmatpush1.bf16.msra.mxu0 %v2651_v0  ;;  %v2807_v0 = vld [vmem:[#allocation6 + $0xe4] ss:$8 sps:$4 sm:$0xff]  }
  0xf1   :  { %1391 = vmatprep.subr.bf16.mxu0 %v2659_v1  ;;  %v2805_v1 = vld [vmem:[#allocation6 + $0xe0] ss:$8 sps:$4 sm:$0xff]   ;;  %1722 = vmatprep.subr.bf16.mxu1 %v2807_v0  ;;  %v2833_v0 = vld [vmem:[%s3202_s7 + $0x30] sm:$0xff]  }
  0xf2   :  { %1723 = vmatpush1.bf16.msra.mxu1 %v2805_v1  ;;  %v2834_v1 = vld [vmem:[%s3202_s7 + $0x38] sm:$0xff]  }
  0xf4   :  { %1392 = vmatpush1.bf16.msra.mxu0 %v2657_v2  ;;  %v2810_v2 = vld [vmem:[#allocation6 + $0xf4] ss:$8 sps:$4 sm:$0xff]  }
  0xf5   :  { %1393 = vmatprep.subr.bf16.mxu0 %v2665_v4  ;;  %v2808_v4 = vld [vmem:[#allocation6 + $0xf0] ss:$8 sps:$4 sm:$0xff]   ;;  %1724 = vmatprep.subr.bf16.mxu1 %v2810_v2 }
  0xf6   :  { %1725 = vmatpush1.bf16.msra.mxu1 %v2808_v4  ;;  %v2367_v4 = vld [vmem:[%s3201_s6] ss:$0 sm:$0xff] }
  0xf8   :  { %1394 = vmatpush1.bf16.msra.mxu0 %v2663_v5  ;;  %v2811_v5 = vld [vmem:[#allocation8 + $0x40] sm:$0xff]  }
  0xf9   :  { %1404 = vmatprep.subr.bf16.mxu0 %v2672_v7  ;;  %2399 = vmatprep.subr.bf16.mxu1 %v2811_v5 }
  0xfb   :  { %1396 = vmatmul.mubr.bf16.vlgmr.msra.gmra.mrb[0].mxu0 %v162_v8 }
  0xfc   :  { %1405 = vmatpush1.bf16.msra.mxu0 %v2670_v9  ;;  %1436 = vmatprep.mubr.bf16.mxu0 %v165_v10  ;;  %v346_v9 = vsub.s32 0, %v3064_v16  ;;  %v342_v10 = vld [vmem:[%s3197_s2] sm:$0x3] }
  0xfd   :  { %1406 = vmatprep.subr.bf16.mxu0 %v2678_v11  ;;  %v350_v11 = vsub.s32 1, %v3064_v16  ;;  %v2814_v16 = vld [vmem:[#allocation8 + $0x8] sm:$0xff]  }
 0x100   :  { %1407 = vmatpush1.bf16.msra.mxu0 %v2676_v19  ;;  %v347_v19 = vrot.slane %v342_v10, %v346_v9 }
 0x101   :  { %1408 = vmatprep.subr.bf16.mxu0 %v2684_v13  ;;  %v351_v13 = vrot.slane %v342_v10, %v350_v11 }
 0x104   :  { %1409 = vmatpush1.bf16.msra.mxu0 %v2682_v14 }
 0x105   :  { %1410 = vmatprep.subr.bf16.mxu0 %v2690_v44 }
 0x108   :  { %1411 = vmatpush1.bf16.msra.mxu0 %v2688_v15 }
 0x109   :  { %1412 = vmatprep.subr.bf16.mxu0 %v2696_v17 }
 0x10c   :  { %1413 = vmatpush1.bf16.msra.mxu0 %v2694_v21 }
 0x10d   :  { %1414 = vmatprep.subr.bf16.mxu0 %v2702_v23 }
 0x110   :  { %1415 = vmatpush1.bf16.msra.mxu0 %v2700_v26 }
 0x111   :  { %1416 = vmatprep.subr.bf16.mxu0 %v2708_v27 }
 0x114   :  { %1417 = vmatpush1.bf16.msra.mxu0 %v2706_v30  ;;  %v2813_v30 = vld [vmem:[#allocation8 + $0x48] sm:$0xff]  }
 0x115   :  { %1418 = vmatprep.subr.bf16.mxu0 %v2714_v31  ;;  %v2815_v31 = vld [vmem:[#allocation8 + $0x50] sm:$0xff]  }
 0x118   :  { %1419 = vmatpush1.bf16.msra.mxu0 %v2712_v34  ;;  %v2818_v34 = vld [vmem:[#allocation8 + $0x18] sm:$0xff]  }
 0x119   :  { %1420 = vmatprep.subr.bf16.mxu0 %v2720_v20  ;;  %v2819_v20 = vld [vmem:[#allocation8 + $0x60] sm:$0xff]  }
 0x11c   :  { %1421 = vmatpush1.bf16.msra.mxu0 %v2718_v37  ;;  %v2822_v37 = vld [vmem:[#allocation8 + $0x28] sm:$0xff]  }
 0x11d   :  { %1422 = vmatprep.subr.bf16.mxu0 %v2726_v38  ;;  %v2823_v38 = vld [vmem:[#allocation8 + $0x70] sm:$0xff]  }
 0x120   :  { %1423 = vmatpush1.bf16.msra.mxu0 %v2724_v42  ;;  %v2826_v42 = vld [vmem:[#allocation8 + $0x38] sm:$0xff]  }
 0x121   :  { %1424 = vmatprep.subr.bf16.mxu0 %v2732_v43  ;;  %v2944_v43 = vmov 0.0  }
 0x124   :  { %1425 = vmatpush1.bf16.msra.mxu0 %v2730_v46  ;;  %v1527_v46 = vrot.slane %v1522_v45, %v346_v9  ;;  %v2835_v9 = vld [vmem:[%s3204_s9] sm:$0xff]  }
 0x125   :  { %1426 = vmatprep.subr.bf16.mxu0 %v2738_v47  ;;  %v1531_v47 = vrot.slane %v1522_v45, %v350_v11  ;;  %v2836_v11 = vld [vmem:[%s3204_s9 + $0x8] sm:$0xff]  }
 0x128   :  { %1427 = vmatpush1.bf16.msra.mxu0 %v2736_v48 }
 0x129   :  { %1428 = vmatprep.subr.bf16.mxu0 %v2744_v51 }
 0x12c   :  { %1429 = vmatpush1.bf16.msra.mxu0 %v2742_v52 }
 0x12d   :  { %1430 = vmatprep.subr.bf16.mxu0 %v2750_v53 }
 0x130   :  { %1431 = vmatpush1.bf16.msra.mxu0 %v2748_v54 }
 0x131   :  { %1432 = vmatprep.subr.bf16.mxu0 %v2756_v55 }
 0x134   :  { %1433 = vmatpush1.bf16.msra.mxu0 %v2754_v56 }
 0x135   :  { %1434 = vmatprep.subr.bf16.mxu0 %v2760_v57  ;;  %v2827_v57 = vld [vmem:[%s3202_s7] sm:$0xff]  }
 0x138   :  { %1435 = vmatpush1.bf16.msra.mxu0 %v2758_v58 }
 0x13b   :  { %1437 = vmatmul.mubr.bf16.vlgmr.msra.gmra.mrb[0].mxu0 %v164_v59  ;;  %v2828_v59 = vld [vmem:[%s3202_s7 + $0x8] sm:$0xff]  }
 0x15b   :  { %v1274_v60 = vpop.f32.mrb[0].mxu1 }
 0x15c   :  { %v1276_v62 = vpop.f32.mrb[1].mxu1  ;;  %v1275_v14 = vadd.f32 %v1274_v60, %v347_v19  ;;  %v2829_v60 = vld [vmem:[%s3202_s7 + $0x10] sm:$0xff]   ;;  %v2384_v19 = vld [vmem:[%s3203_s8] ss:$0 sm:$0xff]  ;;  %s2946_s8 = smov [#allocation9]  }
 0x15d   :  { %v1278_v63 = vpop.f32.mrb[2].mxu1  ;;  %v1277_v44 = vadd.f32 %v1276_v62, %v351_v13  ;;  %v2830_v62 = vld [vmem:[%s3202_s7 + $0x18] sm:$0xff]  }
 0x15e   :  { %v1279_v41 = vpop.f32.mrb[3].mxu1  ;;  %v2831_v63 = vld [vmem:[%s3202_s7 + $0x20] sm:$0xff]  }
 0x15f   :  { %v2832_v41 = vld [vmem:[%s3202_s7 + $0x28] sm:$0xff]  }
 0x17b   :  { %v1479_v6 = vpop.f32.mrb[4].mxu1 }
 0x17c   :  { %v1481_v7 = vpop.f32.mrb[5].mxu1 }
 0x17d   :  { %v1483_v8 = vpop.f32.mrb[6].mxu1 }
 0x17e   :  { %v1484_v3 = vpop.f32.mrb[7].mxu1 }
 0x20e   :  { %v1438_v15 = vpop.f32.mrb[0].mxu0 }
 0x20f   :  { %v2462_v17 = vadd.f32 %v1438_v15, %v1275_v14  ;;  %v1440_v61 = vpop.f32.mrb[1].mxu0 }
 0x210   :  { %v2465_v18 = vadd.f32 %v1440_v61, %v1277_v44  ;;  %v1442_v21 = vpop.f32.mrb[2].mxu0 }
 0x211   :  { %v2463_v22 = vadd.f32 %v2462_v17, %v1479_v6  ;;  %v1443_v23 = vpop.f32.mrb[3].mxu0  ;;  %v2393_v21 = vld [vmem:[%s3205_s10] ss:$0 sm:$0xff]  ;;  %s2147_s10 = sshll.u32 %s2946_s8, 4  ;;  %s2148_s10 = int_to_ptr.vmem [resolvable:$true] %s2147_s10 }
 0x212   :  { %v2466_v24 = vadd.f32 %v2465_v18, %v1481_v7  ;;  %s2911_s19 = scalar_lea.vmem %s2148_s10, 32  ;;  %p2912_p11 = scmp.lt.s32.totalorder %s2148_s10, %s2148_s10 }
 0x213   :  { %v1486_v25 = vmax.f32 %v2463_v22, 0.0 }
 0x214   :  { %v1487_v26 = vmax.f32 %v2466_v24, 0.0 }
 0x215   :  { %v1488_v29 = vpack.c.bf16 %v1486_v25, %v1486_v25 }
 0x216   :  { %v1489_v27 = vpack.c.bf16 %v1487_v26, %v1487_v26  ;;  %v2397_v26 = vld [vmem:[%s3206_s11] ss:$0 sm:$0xff]  ;;  %s2907_s11 = scalar_lea.vmem %s2148_s10, 16 }
 0x217   :  { %p2908_p10 = scmp.ne.s32.totalorder %s2148_s10, %s2907_s11  ;;  %p2913_p12 = scmp.lt.s32.totalorder %s2911_s19, %s2907_s11 }
 0x218   :  { %1726 = vmatprep.mubr.bf16.mxu1 %v1489_v27 }
 0x219   :  { %1727 = vmatmul.mubr.bf16.vlgmr.msra.gmra.mrb[8].mxu1 %v1488_v29  ;;  %p2914_p13 = por %p2913_p12, %p2912_p11 }
 0x21a   :  { %2400 = vmatpush3.bf16.msra.mxu1 %v2812_v28 }
 0x21b   :  { %2401 = vmatprep.subr.bf16.mxu1 %v2813_v30  ;;  %p2915_p0 = pnand %p2914_p13, %p2908_p10 }
 0x21e   :  { %2402 = vmatpush3.bf16.msra.mxu1 %v2814_v16  ;;  %v2398_v16 = vld [vmem:[#allocation2] ss:$0 sm:$0xff] }
 0x21f   :  { %2403 = vmatprep.subr.bf16.mxu1 %v2815_v31 }
 0x222   :  { %2404 = vmatpush3.bf16.msra.mxu1 %v2816_v32 }
 0x223   :  { %2405 = vmatprep.subr.bf16.mxu1 %v2817_v33 }
 0x226   :  { %2406 = vmatpush3.bf16.msra.mxu1 %v2818_v34 }
 0x227   :  { %2407 = vmatprep.subr.bf16.mxu1 %v2819_v20 }
 0x22a   :  { %2408 = vmatpush3.bf16.msra.mxu1 %v2820_v35 }
 0x22b   :  { %2409 = vmatprep.subr.bf16.mxu1 %v2821_v36 }
 0x22e   :  { %2410 = vmatpush3.bf16.msra.mxu1 %v2822_v37 }
 0x22f   :  { %2411 = vmatprep.subr.bf16.mxu1 %v2823_v38 }
 0x232   :  { %2412 = vmatpush3.bf16.msra.mxu1 %v2824_v39  ;;  %v2124_v39 = vand.u32 127, %v99_v12 }
 0x233   :  { %2413 = vmatprep.subr.bf16.mxu1 %v2825_v40 }
 0x234   :  { %vm2126_vm5 = vcmp.eq.s32.totalorder %v2124_v39, 1  ;;  %vm2125_vm6 = vcmp.eq.s32.totalorder %v2124_v39, 0 }
 0x236   :  { %2414 = vmatpush3.bf16.msra.mxu1 %v2826_v42 }
 0x237   :  { %2433 = vmatprep.subr.bf16.mxu1 %v2944_v43 }
 0x2ec   :  { %v1728_v48 = vpop.f32.mrb[8].mxu1 }
 0x2ed   :  { %v1729_v49 = vadd.f32 %v1728_v48, %v1527_v46  ;;  %v1730_v50 = vpop.f32.mrb[9].mxu1 }
 0x2ee   :  { %v1731_v51 = vadd.f32 %v1730_v50, %v1531_v47  ;;  %v1732_v52 = vpop.f32.mrb[10].mxu1 }
 0x2ef   :  { %v1735_v53 = vmax.f32 %v1729_v49, 0.0  ;;  %v1733_v54 = vpop.f32.mrb[11].mxu1 }
 0x2f0   :  { %v1736_v55 = vmax.f32 %v1731_v51, 0.0 }
 0x2f1   :  { %v1737_v58 = vpack.c.bf16 %v1735_v53, %v1735_v53 }
 0x2f2   :  { %v1738_v56 = vpack.c.bf16 %v1736_v55, %v1736_v55 }
 0x2f4   :  { %1906 = vmatprep.mubr.bf16.mxu1 %v1738_v56 }
 0x2f5   :  { %1907 = vmatmul.mubr.bf16.vlgmr.msra.gmra.mrb[12].mxu1 %v1737_v58 }
 0x2f6   :  { %2434 = vmatpush3.bf16.msra.mxu1 %v2827_v57  ;;  %2449 = vmatprep.mubr.msk.bf16.mxu1 %vm2945_vm2, %v2944_v43 }
 0x2f7   :  { %2435 = vmatprep.subr.bf16.mxu1 %v2944_v43 }
 0x2fa   :  { %2436 = vmatpush3.bf16.msra.mxu1 %v2828_v59 }
 0x2fb   :  { %2437 = vmatprep.subr.bf16.mxu1 %v2944_v43 }
 0x2fe   :  { %2438 = vmatpush3.bf16.msra.mxu1 %v2829_v60 }
 0x2ff   :  { %2439 = vmatprep.subr.bf16.mxu1 %v2944_v43 }
 0x302   :  { %2440 = vmatpush3.bf16.msra.mxu1 %v2830_v62 }
 0x303   :  { %2441 = vmatprep.subr.bf16.mxu1 %v2944_v43 }
 0x306   :  { %2442 = vmatpush3.bf16.msra.mxu1 %v2831_v63 }
 0x307   :  { %2443 = vmatprep.subr.bf16.mxu1 %v2944_v43 }
 0x30a   :  { %2444 = vmatpush3.bf16.msra.mxu1 %v2832_v41 }
 0x30b   :  { %2445 = vmatprep.subr.bf16.mxu1 %v2944_v43 }
 0x30e   :  { %2446 = vmatpush3.bf16.msra.mxu1 %v2833_v0 }
 0x30f   :  { %2447 = vmatprep.subr.bf16.mxu1 %v2944_v43 }
 0x312   :  { %2448 = vmatpush3.bf16.msra.mxu1 %v2834_v1 }
 0x313   :  { %2453 = vmatprep.subr.bf16.mxu1 %v2944_v43 }
 0x3c8   :  { %v2415_v2 = vpop.f32.mrb[12].mxu1 }
 0x3c9   :  { %v2416_v5 = vpop.f32.mrb[13].mxu1 }
 0x3ca   :  { %v2417_v6 = vadd.f32 %v2416_v5, %v2415_v2  ;;  %v2418_v7 = vpop.f32.mrb[14].mxu1 }
 0x3cb   :  { %v2419_v8 = vpop.f32.mrb[15].mxu1 }
 0x3cc   :  { %v1909_v3 = vadd.f32 %v2417_v6, %v2367_v4 }
 0x3ce   :  { %v1914_v10 = vpack.c.bf16 %v1909_v3, %v1909_v3 }
 0x3d0   :  { %2450 = vmatmul.mubr.bf16.vlgmr.msra.gmra.mrb[16].mxu1 %v1914_v10 }
 0x3d1   :  { %2454 = vmatpush3.bf16.msra.mxu1 %v2835_v9  ;;  %2457 = vmatprep.mubr.msk.bf16.mxu1 %vm2945_vm2, %v2944_v43 }
 0x3d2   :  { %2455 = vmatprep.subr.bf16.mxu1 %v2944_v43 }
 0x3d5   :  { %2456 = vmatpush3.bf16.msra.mxu1 %v2836_v11 }
 0x4a3   :  { %v2020_v13 = vpop.f32.mrb[16].mxu1 }
 0x4a4   :  { %v2021_v14 = vadd.f32 %v2384_v19, %v2020_v13  ;;  %v2451_v44 = vpop.f32.mrb[17].mxu1 }
 0x4a5   :  { %v2023_v15 = vpop.f32.mrb[18].mxu1 }
 0x4a6   :  { %v2026_v17 = vmax.f32 %v2021_v14, 0.0  ;;  %v2452_v61 = vpop.f32.mrb[19].mxu1 }
 0x4a8   :  { %v2027_v18 = vpack.c.bf16 %v2026_v17, %v2026_v17 }
 0x4aa   :  { %2458 = vmatmul.mubr.msk.bf16.vlgmr.msra.gmra.mrb[20].mxu1 %vm2051_vm3, %v2027_v18 }
 0x57d   :  { %v2089_v22 = vpop.f32.mrb[20].mxu1 }
 0x57e   :  { %v2090_v23 = vadd.f32 %v2393_v21, %v2089_v22  ;;  %v2459_v24 = vpop.f32.mrb[21].mxu1 }
 0x57f   :  { %v2092_v25 = vpop.f32.mrb[22].mxu1 }
 0x580   :  { %v2095_v27 = vmax.f32 %v2090_v23, 0.0  ;;  %v2460_v28 = vpop.f32.mrb[23].mxu1 }
 0x582   :  { %v2103_v29 = vmul.f32 %v2397_v26, %v2095_v27 }
 0x584   :  { %v2105_v30 = vsel %vm2104_vm4, %v2103_v29, 0.0 }
 0x585   :  { %2106 = vadd.xlane.f32.xlu0 %v2105_v30 }
 0x612   :  { %v2107_v31 = vpop.xlane.xlu0 %2106 }
 0x613   :  { %v2115_v32 = vadd.f32 %v2398_v16, %v2107_v31 }
 0x615   :  { %v2116_v33 = vsub.f32 0.0, %v2115_v32 }
 0x617   :  { %v2117_v34 = vmul.f32 1.442695, %v2116_v33 }
 0x619   :  { %2837 = vpow2.f32 %v2117_v34 }
 0x623   :  { %v2838_v20 = vpop.eup %2837 }
 0x624   :  { %v2119_v35 = vadd.f32 1.0, %v2838_v20 }
 0x626   :  { %2839 = vrcp.f32 %v2119_v35 }
 0x630   :  { %v2840_v36 = vpop.eup %2839 }
 0x631   :  { %v2122_v37 = vsub.f32 1.0, %v2840_v36 }
 0x633   :  { %v2492_v38 = vpack.i.bf16 %v2122_v37, %v2840_v36 }
 0x635   :  { %2493 = vperm.xlu0 %2491, %v2492_v38  }
 0x6b4   :  { %v2494_v40 = vpop.permute.xlu0 %2493 }
 0x6b5   :  { %v2496_v42 = vunpack.i.h.bf16 %v2494_v40  ;;  %v2495_v43 = vunpack.i.l.bf16 %v2494_v40 }
 0x6b7   :  { %v2132_v45 = vsel %vm2126_vm5, %v2495_v43, 0.0 }
 0x6b8   :  { %v2138_v46 = vsel %vm2125_vm6, %v2496_v42, %v2132_v45 }
 0x6b9   :  { %v2139_v47 = vpack.c.bf16 %v2138_v46, %v2138_v46 }
 0x6bb   :  { %2140 = vst [vmem:[#allocation9] sm:$0x1] %v2139_v47 }
 0x6bc   :  { %2918 = shalt.err (!%p2915_p0)
}
 0x6bd   :  { %s2919_s23 = scalar_lea.hbm %s3208_s13, 16 }
 0x6be   :  { %p2920_p1 = scmp.ne.s32.totalorder %s3208_s13, %s2919_s23  ;;  %p2923_p2 = scmp.lt.u32.totalorder %s2919_s23, %s3208_s13 }
 0x6c0   :  { %p2925_p3 = pnand %p2923_p2, %p2920_p1 }
 0x6c2   :  { %2928 = shalt.err (!%p2925_p3)
}
 0x6c3   :  { %2150 = dma.vmem_to_hbm [thread:$0]  %s2148_s10, 16, %s3208_s13, [#allocation5]  }
 0x6c4   :  { %2933 = dma.done.wait [#allocation5], 16  }
 0x6c5   :  { %2934 = vsyncadd [#allocation5], 4294967280 }
 0x6c6   :  { %2154 = vsyncpa [#allocation4], 1 }
 0x6c7   :  { %2155 = vsyncpa [#allocation7], 1 }
 0x6c8   :  { %2156 = vsyncpa [#allocation5], 1 }

</bundles_post_ra>
